<compile_context>
chip_gen: v5e
topology: v5e:2x2
jax: 0.10.0
libtpu: 0.0.40
codegen_flags: <defaults>
</compile_context>

<pallas_src>
import jax
import jax.numpy as jnp
from jax import lax
from jax.experimental import pallas as pl
from jax.experimental.pallas import tpu as pltpu

EPS = 1e-12
LANE = 128
SUBLANE = 8


def _round_up(x, m):
    return (x + m - 1) // m * m


def _cdiv(a, b):
    return -(-a // b)


def _pad2(a, rows, cols):
    r, c = a.shape
    if r == rows and c == cols:
        return a  # no-op in the common (already aligned) case -> no extra HBM traffic
    return jnp.pad(a, ((0, rows - r), (0, cols - c)))


def _vmem_capacity_bytes():
    """Physical VMEM of the current TPU generation (64 MiB v7x, 128 MiB v5e/v6e)."""
    try:
        cap = getattr(pltpu.get_tpu_info(), "vmem_capacity_bytes", None)
        if cap:
            return int(cap)
    except Exception:
        pass
    return 64 << 20  # conservative default (v7x per-TC VMEM)


def _layer_norm(x, gamma, beta, true_feat, lane_mask):
    """BertLayerNorm over the last axis.

    The lane dim may be zero-padded up to a multiple of 128; statistics are taken over
    the true feature count (padded lanes of x are exactly zero, and padded gamma/beta
    are zero so padded output lanes stay zero).
    """
    inv_n = 1.0 / float(true_feat)
    mu = jnp.sum(x, axis=-1, keepdims=True) * inv_n
    c = x - mu
    cm = c if lane_mask is None else jnp.where(lane_mask, c, 0.0)
    var = jnp.sum(cm * cm, axis=-1, keepdims=True) * inv_n
    return c * lax.rsqrt(var + EPS) * gamma + beta


def _make_kernel(h_true, h_pad, compute_dtype, tile_n, chunk_rows):
    need_mask = (h_pad != h_true)
    n_full = tile_n // chunk_rows
    rem = tile_n - n_full * chunk_rows  # multiple of 8 (tile_n, chunk_rows both are)

    def kernel(x_ref, w_ref,
               mw1_w_ref, mw1_b_ref, mw_g_ref, mw_be_ref, mw2_w_ref, mw2_b_ref,
               n1_w_ref, n1_b_ref, n_g_ref, n_be_ref, n2_w_ref, n2_b_ref,
               out_ref):
        # Lane mask is reused by every chunk -> hoist it once per grid step.
        lane_mask = (lax.broadcasted_iota(jnp.int32, (1, h_pad), 1) < h_true
                     if need_mask else None)

        def process(r0, rows):
            # ---- map_weight: Linear(P,H) -> ReLU -> LayerNorm -> Linear(H,H) ----
            w = w_ref[pl.ds(r0, rows), :].astype(compute_dtype)
            h = jnp.dot(w, mw1_w_ref[...],
                        preferred_element_type=jnp.float32) + mw1_b_ref[...]
            h = jnp.maximum(h, 0.0)
            h = _layer_norm(h, mw_g_ref[...], mw_be_ref[...], h_true, lane_mask)
            w_mapped = jnp.dot(h.astype(compute_dtype), mw2_w_ref[...],
                               preferred_element_type=jnp.float32) + mw2_b_ref[...]

            # ---- residual add + net: Linear(H,H) -> ReLU -> LayerNorm -> Linear(H,D) ----
            x = x_ref[pl.ds(r0, rows), :] + w_mapped
            h2 = jnp.dot(x.astype(compute_dtype), n1_w_ref[...],
                         preferred_element_type=jnp.float32) + n1_b_ref[...]
            h2 = jnp.maximum(h2, 0.0)
            h2 = _layer_norm(h2, n_g_ref[...], n_be_ref[...], h_true, lane_mask)
            out_ref[pl.ds(r0, rows), :] = (
                jnp.dot(h2.astype(compute_dtype), n2_w_ref[...],
                        preferred_element_type=jnp.float32) + n2_b_ref[...]
            ).astype(out_ref.dtype)

        # Row sub-tiling: per-chunk matmul/ReLU/LN so MXU work of chunk k+1 overlaps the
        # VPU/XLU/EUP work (LayerNorm, ReLU, rsqrt) of chunk k.
        if n_full == 1:
            process(0, chunk_rows)
        elif n_full > 1:
            def body(c, carry):
                process(pl.multiple_of(c * chunk_rows, chunk_rows), chunk_rows)
                return carry
            lax.fori_loop(0, n_full, body, None, unroll=True)
        if rem > 0:
            process(n_full * chunk_rows, rem)

    return kernel


def weighted_action_prediction(input_, weight, params, *,
                               tile_n=None,
                               use_bf16_matmul=True):
    """input_: (B, L, H) f32; weight: (B, L, P, 1) f32; params: unpadded dict (f32)."""
    B, L, H = input_.shape
    P = weight.shape[-2]
    D = params["n2_w"].shape[-1]
    N = B * L

    Hp, Pp, Dp = _round_up(H, LANE), _round_up(P, LANE), _round_up(D, LANE)

    param_dtype = jnp.bfloat16 if use_bf16_matmul else jnp.float32
    compute_dtype = jnp.bfloat16 if use_bf16_matmul else jnp.float32

    # Zero-pad params to lane-aligned shapes.  Weight matrices feed the MXU in param_dtype
    # (bf16 default -> native MXU rate, half the param DMA/VMEM); biases / LN params stay
    # f32 (VPU/EUP elementwise math is f32 on all generations, required on v5e).
    pads = {
        "mw1_w": ((Pp, Hp), param_dtype), "mw1_b": ((1, Hp), jnp.float32),
        "mw_g":  ((1, Hp),  jnp.float32), "mw_be": ((1, Hp), jnp.float32),
        "mw2_w": ((Hp, Hp), param_dtype), "mw2_b": ((1, Hp), jnp.float32),
        "n1_w":  ((Hp, Hp), param_dtype), "n1_b":  ((1, Hp), jnp.float32),
        "n_g":   ((1, Hp),  jnp.float32), "n_be":  ((1, Hp), jnp.float32),
        "n2_w":  ((Hp, Dp), param_dtype), "n2_b":  ((1, Dp), jnp.float32),
    }
    param_order = list(pads.keys())
    padded_params = [_pad2(params[k], *pads[k][0]).astype(pads[k][1])
                     for k in param_order]
    param_bytes = sum(s[0] * s[1] * jnp.dtype(dt).itemsize for (s, dt) in pads.values())

    # ---- generation-aware tiling ----
    vmem_cap = _vmem_capacity_bytes()
    budget = int(vmem_cap * 7 // 10)           # leave headroom for compiler scratch
    if tile_n is None:
        tile_n = 1024 if vmem_cap >= (96 << 20) else 512   # 1024 on v5e/v6e, 512 on v7x

    tile_n = max(SUBLANE, min(_round_up(tile_n, SUBLANE), _round_up(max(N, 1), SUBLANE)))
    # Guarantee >= 2 grid steps so the "parallel" row axis shards across v7x's 2 TCs
    # (harmless one extra ~0.35 us step on single-TC v5e/v6e).
    if N >= 2 * SUBLANE:
        tile_n = min(tile_n, _round_up(_cdiv(N, 2), SUBLANE))
    # Balance tiles so wrapper-side row padding is minimal (usually zero extra rows).
    nt = _cdiv(N, tile_n)
    tile_n = _round_up(_cdiv(N, nt), SUBLANE)

    def chunk_of(tn):
        return tn if tn <= 256 else 256

    def vmem_need(tn):
        io = 2 * tn * (Hp + Pp + Dp) * 4       # double-buffered f32 row tiles (in + out)
        inter = 10 * chunk_of(tn) * Hp * 4     # per-chunk f32 intermediates (estimate)
        return 2 * param_bytes + io + inter    # params counted double-buffered (worst case)

    while tile_n > SUBLANE and vmem_need(tile_n) > budget:
        tile_n = max(SUBLANE, _round_up(tile_n // 2, SUBLANE))
    # TODO(synk): for very large H (>= ~2048) on v7x, add a K-reduction grid axis
    # ("arbitrary") with an f32 VMEM accumulator instead of only shrinking tile_n.

    nt = _cdiv(N, tile_n)
    Npad = nt * tile_n
    chunk_rows = chunk_of(tile_n)

    # Flatten + squeeze(-1); pad rows/lanes only when needed (padded rows are inert and
    # sliced off; padded lanes are zero so LN/outputs match the unpadded reference).
    x2d = _pad2(input_.reshape(N, H), Npad, Hp)
    w2d = _pad2(weight.reshape(N, P), Npad, Pp)

    row_spec = lambda feat: pl.BlockSpec((tile_n, feat), lambda i: (i, 0))
    out_spec = pl.BlockSpec((tile_n, Dp), lambda i: (i, 0))

    flops = 2 * Npad * (Pp * Hp + 2 * Hp * Hp + Hp * Dp)
    bytes_accessed = 4 * Npad * (Hp + Pp + Dp) + param_bytes
    cost = pl.CostEstimate(flops=flops, transcendentals=2 * Npad,
                           bytes_accessed=bytes_accessed)

    # Never request more scoped VMEM than physically exists (v7x: 64 MiB).
    hard_cap = min(vmem_cap - (8 << 20), 100 << 20)
    vmem_limit = int(max(16 << 20,
                         min(vmem_need(tile_n) * 5 // 4 + (2 << 20), hard_cap)))

    kernel = _make_kernel(H, Hp, compute_dtype, tile_n, chunk_rows)

    def build_and_run(param_buffer_count):
        if param_buffer_count is None:
            const_spec = lambda r, c: pl.BlockSpec((r, c), lambda i: (0, 0))
        else:
            pm = pl.Buffered(param_buffer_count)
            const_spec = lambda r, c: pl.BlockSpec((r, c), lambda i: (0, 0),
                                                   pipeline_mode=pm)
        param_specs = [const_spec(*pads[k][0]) for k in param_order]
        call = pl.pallas_call(
            kernel,
            out_shape=jax.ShapeDtypeStruct((Npad, Dp), jnp.float32),
            grid_spec=pltpu.PrefetchScalarGridSpec(
                num_scalar_prefetch=0,
                grid=(nt,),
                in_specs=[row_spec(Hp), row_spec(Pp)] + param_specs,
                out_specs=out_spec),
            compiler_params=pltpu.CompilerParams(
                dimension_semantics=("parallel",),   # shards rows across v7x's 2 TCs
                vmem_limit_bytes=vmem_limit),
            cost_estimate=cost,
        )
        return jax.block_until_ready(call(x2d, w2d, *padded_params))

    try:
        # Constant-index param blocks only need a single VMEM buffer each.
        out2d = build_and_run(1)
    except Exception:
        # TODO(synk): drop this fallback once pipeline_mode=pl.Buffered(1) for
        # constant-index blocks is confirmed supported on the deployed JAX version.
        out2d = build_and_run(None)

    return out2d[:N, :D].reshape(B, L, D)


def init_params(key, hidden_size, label_dim, num_patches):
    ks = jax.random.split(key, 8)

    def lin(k, fan_in, fan_out):
        scale = 1.0 / jnp.sqrt(fan_in)
        return jax.random.uniform(k, (fan_in, fan_out), jnp.float32, -scale, scale)

    H, D, P = hidden_size, label_dim, num_patches
    return {
        # map_weight: Linear(P,H), LN(H), Linear(H,H)
        "mw1_w": lin(ks[0], P, H),
        "mw1_b": jax.random.normal(ks[1], (1, H), jnp.float32) * 0.02,
        "mw_g":  jnp.ones((1, H), jnp.float32),
        "mw_be": jnp.zeros((1, H), jnp.float32),
        "mw2_w": lin(ks[2], H, H),
        "mw2_b": jax.random.normal(ks[3], (1, H), jnp.float32) * 0.02,
        # net: Linear(H,H), LN(H), Linear(H,D)
        "n1_w":  lin(ks[4], H, H),
        "n1_b":  jax.random.normal(ks[5], (1, H), jnp.float32) * 0.02,
        "n_g":   jnp.ones((1, H), jnp.float32),
        "n_be":  jnp.zeros((1, H), jnp.float32),
        "n2_w":  lin(ks[6], H, D),
        "n2_b":  jax.random.normal(ks[7], (1, D), jnp.float32) * 0.02,
    }


def reference_forward(input_, weight, p):
    """Pure-JAX reference replicating the PyTorch module semantics."""
    w = jnp.squeeze(weight, -1)
    h = jnp.maximum(w @ p["mw1_w"] + p["mw1_b"], 0.0)
    mu = h.mean(-1, keepdims=True)
    var = ((h - mu) ** 2).mean(-1, keepdims=True)
    h = (h - mu) / jnp.sqrt(var + EPS) * p["mw_g"] + p["mw_be"]
    w_mapped = h @ p["mw2_w"] + p["mw2_b"]
    x = input_ + w_mapped
    h2 = jnp.maximum(x @ p["n1_w"] + p["n1_b"], 0.0)
    mu2 = h2.mean(-1, keepdims=True)
    var2 = ((h2 - mu2) ** 2).mean(-1, keepdims=True)
    h2 = (h2 - mu2) / jnp.sqrt(var2 + EPS) * p["n_g"] + p["n_be"]
    return h2 @ p["n2_w"] + p["n2_b"]


if __name__ == "__main__":
    B, L, H, P, D = 2, 8, 32, 16, 4   # batch, seq, hidden, num_patches, label_dim
    key = jax.random.PRNGKey(0)
    k_in, k_w, k_p = jax.random.split(key, 3)

    input_ = jax.random.normal(k_in, (B, L, H), jnp.float32)
    weight = jax.random.normal(k_w, (B, L, P, 1), jnp.float32)
    params = init_params(k_p, H, D, P)

    ref = reference_forward(input_, weight, params)

    # Default fast path: bf16 MXU operands, f32 accumulation + f32 ReLU/LayerNorm math.
    out = jax.block_until_ready(weighted_action_prediction(input_, weight, params))
    assert out.shape == (B, L, D)
    assert bool(jnp.all(jnp.isfinite(out)))
    assert jnp.allclose(out, ref, atol=0.1, rtol=0.1), "bf16 path mismatch vs reference"

    # Exact-f32 path: semantics identical to the PyTorch module.
    out_f32 = jax.block_until_ready(
        weighted_action_prediction(input_, weight, params, use_bf16_matmul=False))
    assert out_f32.shape == (B, L, D)
    assert jnp.allclose(out_f32, ref, atol=1e-4, rtol=1e-4), "f32 path mismatch vs reference"

    print("KERNEL_OK")
</pallas_src>

<mosaic_0001>
module attributes {stable_mosaic.version = 11 : i64} {
  func.func @kernel(%arg0: i32, %arg1: memref<8x128xf32, #tpu.memory_space<vmem>>, %arg2: memref<8x128xf32, #tpu.memory_space<vmem>>, %arg3: memref<128x128xbf16, #tpu.memory_space<vmem>>, %arg4: memref<1x128xf32, #tpu.memory_space<vmem>>, %arg5: memref<1x128xf32, #tpu.memory_space<vmem>>, %arg6: memref<1x128xf32, #tpu.memory_space<vmem>>, %arg7: memref<128x128xbf16, #tpu.memory_space<vmem>>, %arg8: memref<1x128xf32, #tpu.memory_space<vmem>>, %arg9: memref<128x128xbf16, #tpu.memory_space<vmem>>, %arg10: memref<1x128xf32, #tpu.memory_space<vmem>>, %arg11: memref<1x128xf32, #tpu.memory_space<vmem>>, %arg12: memref<1x128xf32, #tpu.memory_space<vmem>>, %arg13: memref<128x128xbf16, #tpu.memory_space<vmem>>, %arg14: memref<1x128xf32, #tpu.memory_space<vmem>>, %arg15: memref<8x128xf32, #tpu.memory_space<vmem>>) attributes {dimension_semantics = [#tpu.dimension_semantics<parallel>], iteration_bounds = array<i64: 2>, scalar_prefetch = 0 : i64, scratch_operands = 0 : i64, tpu.core_type = #tpu.core_type<tc>, window_params = [{transform_indices = @transform_0, window_bounds = array<i64: 8, 128>}, {transform_indices = @transform_1, window_bounds = array<i64: 8, 128>}, {pipeline_mode = #tpu.pipeline_mode<synchronous>, transform_indices = @transform_2, window_bounds = array<i64: 128, 128>}, {pipeline_mode = #tpu.pipeline_mode<synchronous>, transform_indices = @transform_3, window_bounds = array<i64: 1, 128>}, {pipeline_mode = #tpu.pipeline_mode<synchronous>, transform_indices = @transform_4, window_bounds = array<i64: 1, 128>}, {pipeline_mode = #tpu.pipeline_mode<synchronous>, transform_indices = @transform_5, window_bounds = array<i64: 1, 128>}, {pipeline_mode = #tpu.pipeline_mode<synchronous>, transform_indices = @transform_6, window_bounds = array<i64: 128, 128>}, {pipeline_mode = #tpu.pipeline_mode<synchronous>, transform_indices = @transform_7, window_bounds = array<i64: 1, 128>}, {pipeline_mode = #tpu.pipeline_mode<synchronous>, transform_indices = @transform_8, window_bounds = array<i64: 128, 128>}, {pipeline_mode = #tpu.pipeline_mode<synchronous>, transform_indices = @transform_9, window_bounds = array<i64: 1, 128>}, {pipeline_mode = #tpu.pipeline_mode<synchronous>, transform_indices = @transform_10, window_bounds = array<i64: 1, 128>}, {pipeline_mode = #tpu.pipeline_mode<synchronous>, transform_indices = @transform_11, window_bounds = array<i64: 1, 128>}, {pipeline_mode = #tpu.pipeline_mode<synchronous>, transform_indices = @transform_12, window_bounds = array<i64: 128, 128>}, {pipeline_mode = #tpu.pipeline_mode<synchronous>, transform_indices = @transform_13, window_bounds = array<i64: 1, 128>}, {transform_indices = @transform_14, window_bounds = array<i64: 8, 128>}]} {
    %0 = tpu.iota {dimensions = array<i32: 1>} : vector<1x128xi32>
    %c32_i32 = arith.constant 32 : i32
    %1 = vector.broadcast %c32_i32 : i32 to vector<1x128xi32>
    %2 = arith.cmpi slt, %0, %1 : vector<1x128xi32>
    %c0 = arith.constant 0 : index
    %c0_0 = arith.constant 0 : index
    %3 = vector.load %arg2[%c0, %c0_0] : memref<8x128xf32, #tpu.memory_space<vmem>>, vector<8x128xf32>
    %4 = arith.truncf %3 : vector<8x128xf32> to vector<8x128xbf16>
    %c0_1 = arith.constant 0 : index
    %c0_2 = arith.constant 0 : index
    %5 = vector.load %arg3[%c0_1, %c0_2] : memref<128x128xbf16, #tpu.memory_space<vmem>>, vector<128x128xbf16>
    %cst = arith.constant dense<0.000000e+00> : vector<8x128xf32>
    %6 = tpu.matmul %4, %5, %cst {dimension_numbers = #tpu.dot_dimension_numbers<[1], [0], [0], [1], [0, 0, 1, 1], [], []>} : vector<8x128xbf16>, vector<128x128xbf16>, vector<8x128xf32> -> vector<8x128xf32>
    %c0_3 = arith.constant 0 : index
    %c0_4 = arith.constant 0 : index
    %7 = vector.load %arg4[%c0_3, %c0_4] : memref<1x128xf32, #tpu.memory_space<vmem>>, vector<1x128xf32>
    %8 = vector.broadcast %7 : vector<1x128xf32> to vector<8x128xf32>
    %9 = arith.addf %6, %8 : vector<8x128xf32>
    %cst_5 = arith.constant 0.000000e+00 : f32
    %10 = vector.broadcast %cst_5 : f32 to vector<8x128xf32>
    %11 = arith.maximumf %9, %10 : vector<8x128xf32>
    %c0_6 = arith.constant 0 : index
    %c0_7 = arith.constant 0 : index
    %12 = vector.load %arg5[%c0_6, %c0_7] : memref<1x128xf32, #tpu.memory_space<vmem>>, vector<1x128xf32>
    %c0_8 = arith.constant 0 : index
    %c0_9 = arith.constant 0 : index
    %13 = vector.load %arg6[%c0_8, %c0_9] : memref<1x128xf32, #tpu.memory_space<vmem>>, vector<1x128xf32>
    %cst_10 = arith.constant dense<0.000000e+00> : vector<8xf32>
    %14 = vector.multi_reduction <add>, %11, %cst_10 [1] : vector<8x128xf32> to vector<8xf32>
    %15 = vector.shape_cast %14 : vector<8xf32> to vector<8x1xf32>
    %cst_11 = arith.constant 3.125000e-02 : f32
    %16 = vector.broadcast %cst_11 : f32 to vector<8x1xf32>
    %17 = arith.mulf %15, %16 : vector<8x1xf32>
    %18 = vector.broadcast %17 : vector<8x1xf32> to vector<8x128xf32>
    %19 = arith.subf %11, %18 : vector<8x128xf32>
    %cst_12 = arith.constant 0.000000e+00 : f32
    %20 = vector.shape_cast %2 : vector<1x128xi1> to vector<1x128xi1>
    %21 = vector.broadcast %20 : vector<1x128xi1> to vector<8x128xi1>
    %22 = vector.broadcast %cst_12 : f32 to vector<8x128xf32>
    %23 = arith.select %21, %19, %22 : vector<8x128xi1>, vector<8x128xf32>
    %24 = arith.mulf %23, %23 : vector<8x128xf32>
    %cst_13 = arith.constant dense<0.000000e+00> : vector<8xf32>
    %25 = vector.multi_reduction <add>, %24, %cst_13 [1] : vector<8x128xf32> to vector<8xf32>
    %26 = vector.shape_cast %25 : vector<8xf32> to vector<8x1xf32>
    %cst_14 = arith.constant 3.125000e-02 : f32
    %27 = vector.broadcast %cst_14 : f32 to vector<8x1xf32>
    %28 = arith.mulf %26, %27 : vector<8x1xf32>
    %cst_15 = arith.constant 9.99999996E-13 : f32
    %29 = vector.broadcast %cst_15 : f32 to vector<8x1xf32>
    %30 = arith.addf %28, %29 : vector<8x1xf32>
    %31 = math.rsqrt %30 : vector<8x1xf32>
    %32 = vector.broadcast %31 : vector<8x1xf32> to vector<8x128xf32>
    %33 = arith.mulf %19, %32 : vector<8x128xf32>
    %34 = vector.broadcast %12 : vector<1x128xf32> to vector<8x128xf32>
    %35 = arith.mulf %33, %34 : vector<8x128xf32>
    %36 = vector.broadcast %13 : vector<1x128xf32> to vector<8x128xf32>
    %37 = arith.addf %35, %36 : vector<8x128xf32>
    %38 = arith.truncf %37 : vector<8x128xf32> to vector<8x128xbf16>
    %c0_16 = arith.constant 0 : index
    %c0_17 = arith.constant 0 : index
    %39 = vector.load %arg7[%c0_16, %c0_17] : memref<128x128xbf16, #tpu.memory_space<vmem>>, vector<128x128xbf16>
    %cst_18 = arith.constant dense<0.000000e+00> : vector<8x128xf32>
    %40 = tpu.matmul %38, %39, %cst_18 {dimension_numbers = #tpu.dot_dimension_numbers<[1], [0], [0], [1], [0, 0, 1, 1], [], []>} : vector<8x128xbf16>, vector<128x128xbf16>, vector<8x128xf32> -> vector<8x128xf32>
    %c0_19 = arith.constant 0 : index
    %c0_20 = arith.constant 0 : index
    %41 = vector.load %arg8[%c0_19, %c0_20] : memref<1x128xf32, #tpu.memory_space<vmem>>, vector<1x128xf32>
    %42 = vector.broadcast %41 : vector<1x128xf32> to vector<8x128xf32>
    %43 = arith.addf %40, %42 : vector<8x128xf32>
    %c0_21 = arith.constant 0 : index
    %c0_22 = arith.constant 0 : index
    %44 = vector.load %arg1[%c0_21, %c0_22] : memref<8x128xf32, #tpu.memory_space<vmem>>, vector<8x128xf32>
    %45 = arith.addf %44, %43 : vector<8x128xf32>
    %46 = arith.truncf %45 : vector<8x128xf32> to vector<8x128xbf16>
    %c0_23 = arith.constant 0 : index
    %c0_24 = arith.constant 0 : index
    %47 = vector.load %arg9[%c0_23, %c0_24] : memref<128x128xbf16, #tpu.memory_space<vmem>>, vector<128x128xbf16>
    %cst_25 = arith.constant dense<0.000000e+00> : vector<8x128xf32>
    %48 = tpu.matmul %46, %47, %cst_25 {dimension_numbers = #tpu.dot_dimension_numbers<[1], [0], [0], [1], [0, 0, 1, 1], [], []>} : vector<8x128xbf16>, vector<128x128xbf16>, vector<8x128xf32> -> vector<8x128xf32>
    %c0_26 = arith.constant 0 : index
    %c0_27 = arith.constant 0 : index
    %49 = vector.load %arg10[%c0_26, %c0_27] : memref<1x128xf32, #tpu.memory_space<vmem>>, vector<1x128xf32>
    %50 = vector.broadcast %49 : vector<1x128xf32> to vector<8x128xf32>
    %51 = arith.addf %48, %50 : vector<8x128xf32>
    %cst_28 = arith.constant 0.000000e+00 : f32
    %52 = vector.broadcast %cst_28 : f32 to vector<8x128xf32>
    %53 = arith.maximumf %51, %52 : vector<8x128xf32>
    %c0_29 = arith.constant 0 : index
    %c0_30 = arith.constant 0 : index
    %54 = vector.load %arg11[%c0_29, %c0_30] : memref<1x128xf32, #tpu.memory_space<vmem>>, vector<1x128xf32>
    %c0_31 = arith.constant 0 : index
    %c0_32 = arith.constant 0 : index
    %55 = vector.load %arg12[%c0_31, %c0_32] : memref<1x128xf32, #tpu.memory_space<vmem>>, vector<1x128xf32>
    %cst_33 = arith.constant dense<0.000000e+00> : vector<8xf32>
    %56 = vector.multi_reduction <add>, %53, %cst_33 [1] : vector<8x128xf32> to vector<8xf32>
    %57 = vector.shape_cast %56 : vector<8xf32> to vector<8x1xf32>
    %cst_34 = arith.constant 3.125000e-02 : f32
    %58 = vector.broadcast %cst_34 : f32 to vector<8x1xf32>
    %59 = arith.mulf %57, %58 : vector<8x1xf32>
    %60 = vector.broadcast %59 : vector<8x1xf32> to vector<8x128xf32>
    %61 = arith.subf %53, %60 : vector<8x128xf32>
    %cst_35 = arith.constant 0.000000e+00 : f32
    %62 = vector.shape_cast %2 : vector<1x128xi1> to vector<1x128xi1>
    %63 = vector.broadcast %62 : vector<1x128xi1> to vector<8x128xi1>
    %64 = vector.broadcast %cst_35 : f32 to vector<8x128xf32>
    %65 = arith.select %63, %61, %64 : vector<8x128xi1>, vector<8x128xf32>
    %66 = arith.mulf %65, %65 : vector<8x128xf32>
    %cst_36 = arith.constant dense<0.000000e+00> : vector<8xf32>
    %67 = vector.multi_reduction <add>, %66, %cst_36 [1] : vector<8x128xf32> to vector<8xf32>
    %68 = vector.shape_cast %67 : vector<8xf32> to vector<8x1xf32>
    %cst_37 = arith.constant 3.125000e-02 : f32
    %69 = vector.broadcast %cst_37 : f32 to vector<8x1xf32>
    %70 = arith.mulf %68, %69 : vector<8x1xf32>
    %cst_38 = arith.constant 9.99999996E-13 : f32
    %71 = vector.broadcast %cst_38 : f32 to vector<8x1xf32>
    %72 = arith.addf %70, %71 : vector<8x1xf32>
    %73 = math.rsqrt %72 : vector<8x1xf32>
    %74 = vector.broadcast %73 : vector<8x1xf32> to vector<8x128xf32>
    %75 = arith.mulf %61, %74 : vector<8x128xf32>
    %76 = vector.broadcast %54 : vector<1x128xf32> to vector<8x128xf32>
    %77 = arith.mulf %75, %76 : vector<8x128xf32>
    %78 = vector.broadcast %55 : vector<1x128xf32> to vector<8x128xf32>
    %79 = arith.addf %77, %78 : vector<8x128xf32>
    %80 = arith.truncf %79 : vector<8x128xf32> to vector<8x128xbf16>
    %c0_39 = arith.constant 0 : index
    %c0_40 = arith.constant 0 : index
    %81 = vector.load %arg13[%c0_39, %c0_40] : memref<128x128xbf16, #tpu.memory_space<vmem>>, vector<128x128xbf16>
    %cst_41 = arith.constant dense<0.000000e+00> : vector<8x128xf32>
    %82 = tpu.matmul %80, %81, %cst_41 {dimension_numbers = #tpu.dot_dimension_numbers<[1], [0], [0], [1], [0, 0, 1, 1], [], []>} : vector<8x128xbf16>, vector<128x128xbf16>, vector<8x128xf32> -> vector<8x128xf32>
    %c0_42 = arith.constant 0 : index
    %c0_43 = arith.constant 0 : index
    %83 = vector.load %arg14[%c0_42, %c0_43] : memref<1x128xf32, #tpu.memory_space<vmem>>, vector<1x128xf32>
    %84 = vector.broadcast %83 : vector<1x128xf32> to vector<8x128xf32>
    %85 = arith.addf %82, %84 : vector<8x128xf32>
    %c0_44 = arith.constant 0 : index
    %c0_45 = arith.constant 0 : index
    %86 = vector.load %arg15[%c0_44, %c0_45] : memref<8x128xf32, #tpu.memory_space<vmem>>, vector<8x128xf32>
    tpu.vector_store %arg15[%c0_44, %c0_45], %85 {strides = array<i32>} : memref<8x128xf32, #tpu.memory_space<vmem>>, vector<8x128xf32>,
    return
  }
  func.func @transform_0(%arg0: i32) -> (i32, i32) {
    %c0_i32 = arith.constant 0 : i32
    %c0_i32_0 = arith.constant 0 : i32
    return %arg0, %c0_i32 : i32, i32
  }
  func.func @transform_1(%arg0: i32) -> (i32, i32) {
    %c0_i32 = arith.constant 0 : i32
    %c0_i32_0 = arith.constant 0 : i32
    return %arg0, %c0_i32 : i32, i32
  }
  func.func @transform_2(%arg0: i32) -> (i32, i32) {
    %c0_i32 = arith.constant 0 : i32
    %c0_i32_0 = arith.constant 0 : i32
    %c0_i32_1 = arith.constant 0 : i32
    return %c0_i32, %c0_i32_0 : i32, i32
  }
  func.func @transform_3(%arg0: i32) -> (i32, i32) {
    %c0_i32 = arith.constant 0 : i32
    %c0_i32_0 = arith.constant 0 : i32
    %c0_i32_1 = arith.constant 0 : i32
    return %c0_i32, %c0_i32_0 : i32, i32
  }
  func.func @transform_4(%arg0: i32) -> (i32, i32) {
    %c0_i32 = arith.constant 0 : i32
    %c0_i32_0 = arith.constant 0 : i32
    %c0_i32_1 = arith.constant 0 : i32
    return %c0_i32, %c0_i32_0 : i32, i32
  }
  func.func @transform_5(%arg0: i32) -> (i32, i32) {
    %c0_i32 = arith.constant 0 : i32
    %c0_i32_0 = arith.constant 0 : i32
    %c0_i32_1 = arith.constant 0 : i32
    return %c0_i32, %c0_i32_0 : i32, i32
  }
  func.func @transform_6(%arg0: i32) -> (i32, i32) {
    %c0_i32 = arith.constant 0 : i32
    %c0_i32_0 = arith.constant 0 : i32
    %c0_i32_1 = arith.constant 0 : i32
    return %c0_i32, %c0_i32_0 : i32, i32
  }
  func.func @transform_7(%arg0: i32) -> (i32, i32) {
    %c0_i32 = arith.constant 0 : i32
    %c0_i32_0 = arith.constant 0 : i32
    %c0_i32_1 = arith.constant 0 : i32
    return %c0_i32, %c0_i32_0 : i32, i32
  }
  func.func @transform_8(%arg0: i32) -> (i32, i32) {
    %c0_i32 = arith.constant 0 : i32
    %c0_i32_0 = arith.constant 0 : i32
    %c0_i32_1 = arith.constant 0 : i32
    return %c0_i32, %c0_i32_0 : i32, i32
  }
  func.func @transform_9(%arg0: i32) -> (i32, i32) {
    %c0_i32 = arith.constant 0 : i32
    %c0_i32_0 = arith.constant 0 : i32
    %c0_i32_1 = arith.constant 0 : i32
    return %c0_i32, %c0_i32_0 : i32, i32
  }
  func.func @transform_10(%arg0: i32) -> (i32, i32) {
    %c0_i32 = arith.constant 0 : i32
    %c0_i32_0 = arith.constant 0 : i32
    %c0_i32_1 = arith.constant 0 : i32
    return %c0_i32, %c0_i32_0 : i32, i32
  }
  func.func @transform_11(%arg0: i32) -> (i32, i32) {
    %c0_i32 = arith.constant 0 : i32
    %c0_i32_0 = arith.constant 0 : i32
    %c0_i32_1 = arith.constant 0 : i32
    return %c0_i32, %c0_i32_0 : i32, i32
  }
  func.func @transform_12(%arg0: i32) -> (i32, i32) {
    %c0_i32 = arith.constant 0 : i32
    %c0_i32_0 = arith.constant 0 : i32
    %c0_i32_1 = arith.constant 0 : i32
    return %c0_i32, %c0_i32_0 : i32, i32
  }
  func.func @transform_13(%arg0: i32) -> (i32, i32) {
    %c0_i32 = arith.constant 0 : i32
    %c0_i32_0 = arith.constant 0 : i32
    %c0_i32_1 = arith.constant 0 : i32
    return %c0_i32, %c0_i32_0 : i32, i32
  }
  func.func @transform_14(%arg0: i32) -> (i32, i32) {
    %c0_i32 = arith.constant 0 : i32
    %c0_i32_0 = arith.constant 0 : i32
    return %arg0, %c0_i32 : i32, i32
  }
}

module attributes {stable_mosaic.version = 11 : i64} {
  func.func @kernel(%arg0: i32, %arg1: memref<8x128xf32, #tpu.memory_space<vmem>>, %arg2: memref<8x128xf32, #tpu.memory_space<vmem>>, %arg3: memref<128x128xbf16, #tpu.memory_space<vmem>>, %arg4: memref<1x128xf32, #tpu.memory_space<vmem>>, %arg5: memref<1x128xf32, #tpu.memory_space<vmem>>, %arg6: memref<1x128xf32, #tpu.memory_space<vmem>>, %arg7: memref<128x128xbf16, #tpu.memory_space<vmem>>, %arg8: memref<1x128xf32, #tpu.memory_space<vmem>>, %arg9: memref<128x128xbf16, #tpu.memory_space<vmem>>, %arg10: memref<1x128xf32, #tpu.memory_space<vmem>>, %arg11: memref<1x128xf32, #tpu.memory_space<vmem>>, %arg12: memref<1x128xf32, #tpu.memory_space<vmem>>, %arg13: memref<128x128xbf16, #tpu.memory_space<vmem>>, %arg14: memref<1x128xf32, #tpu.memory_space<vmem>>, %arg15: memref<8x128xf32, #tpu.memory_space<vmem>>) attributes {dimension_semantics = [#tpu.dimension_semantics<parallel>], iteration_bounds = array<i64: 2>, scalar_prefetch = 0 : i64, scratch_operands = 0 : i64, tpu.core_type = #tpu.core_type<tc>, window_params = [{transform_indices = @transform_0, window_bounds = array<i64: 8, 128>}, {transform_indices = @transform_1, window_bounds = array<i64: 8, 128>}, {pipeline_mode = #tpu.pipeline_mode<synchronous>, transform_indices = @transform_2, window_bounds = array<i64: 128, 128>}, {pipeline_mode = #tpu.pipeline_mode<synchronous>, transform_indices = @transform_3, window_bounds = array<i64: 1, 128>}, {pipeline_mode = #tpu.pipeline_mode<synchronous>, transform_indices = @transform_4, window_bounds = array<i64: 1, 128>}, {pipeline_mode = #tpu.pipeline_mode<synchronous>, transform_indices = @transform_5, window_bounds = array<i64: 1, 128>}, {pipeline_mode = #tpu.pipeline_mode<synchronous>, transform_indices = @transform_6, window_bounds = array<i64: 128, 128>}, {pipeline_mode = #tpu.pipeline_mode<synchronous>, transform_indices = @transform_7, window_bounds = array<i64: 1, 128>}, {pipeline_mode = #tpu.pipeline_mode<synchronous>, transform_indices = @transform_8, window_bounds = array<i64: 128, 128>}, {pipeline_mode = #tpu.pipeline_mode<synchronous>, transform_indices = @transform_9, window_bounds = array<i64: 1, 128>}, {pipeline_mode = #tpu.pipeline_mode<synchronous>, transform_indices = @transform_10, window_bounds = array<i64: 1, 128>}, {pipeline_mode = #tpu.pipeline_mode<synchronous>, transform_indices = @transform_11, window_bounds = array<i64: 1, 128>}, {pipeline_mode = #tpu.pipeline_mode<synchronous>, transform_indices = @transform_12, window_bounds = array<i64: 128, 128>}, {pipeline_mode = #tpu.pipeline_mode<synchronous>, transform_indices = @transform_13, window_bounds = array<i64: 1, 128>}, {transform_indices = @transform_14, window_bounds = array<i64: 8, 128>}]} {
    %0 = tpu.iota {dimensions = array<i32: 1>} : vector<1x128xi32>
    %c32_i32 = arith.constant 32 : i32
    %1 = vector.broadcast %c32_i32 : i32 to vector<1x128xi32>
    %2 = arith.cmpi slt, %0, %1 : vector<1x128xi32>
    %c0 = arith.constant 0 : index
    %c0_0 = arith.constant 0 : index
    %3 = vector.load %arg2[%c0, %c0_0] : memref<8x128xf32, #tpu.memory_space<vmem>>, vector<8x128xf32>
    %4 = arith.truncf %3 : vector<8x128xf32> to vector<8x128xbf16>
    %c0_1 = arith.constant 0 : index
    %c0_2 = arith.constant 0 : index
    %5 = vector.load %arg3[%c0_1, %c0_2] : memref<128x128xbf16, #tpu.memory_space<vmem>>, vector<128x128xbf16>
    %cst = arith.constant dense<0.000000e+00> : vector<8x128xf32>
    %6 = tpu.matmul %4, %5, %cst {dimension_numbers = #tpu.dot_dimension_numbers<[1], [0], [0], [1], [0, 0, 1, 1], [], []>} : vector<8x128xbf16>, vector<128x128xbf16>, vector<8x128xf32> -> vector<8x128xf32>
    %c0_3 = arith.constant 0 : index
    %c0_4 = arith.constant 0 : index
    %7 = vector.load %arg4[%c0_3, %c0_4] : memref<1x128xf32, #tpu.memory_space<vmem>>, vector<1x128xf32>
    %8 = vector.broadcast %7 : vector<1x128xf32> to vector<8x128xf32>
    %9 = arith.addf %6, %8 : vector<8x128xf32>
    %cst_5 = arith.constant 0.000000e+00 : f32
    %10 = vector.broadcast %cst_5 : f32 to vector<8x128xf32>
    %11 = arith.maximumf %9, %10 : vector<8x128xf32>
    %c0_6 = arith.constant 0 : index
    %c0_7 = arith.constant 0 : index
    %12 = vector.load %arg5[%c0_6, %c0_7] : memref<1x128xf32, #tpu.memory_space<vmem>>, vector<1x128xf32>
    %c0_8 = arith.constant 0 : index
    %c0_9 = arith.constant 0 : index
    %13 = vector.load %arg6[%c0_8, %c0_9] : memref<1x128xf32, #tpu.memory_space<vmem>>, vector<1x128xf32>
    %cst_10 = arith.constant dense<0.000000e+00> : vector<8xf32>
    %14 = vector.multi_reduction <add>, %11, %cst_10 [1] : vector<8x128xf32> to vector<8xf32>
    %15 = vector.shape_cast %14 : vector<8xf32> to vector<8x1xf32>
    %cst_11 = arith.constant 3.125000e-02 : f32
    %16 = vector.broadcast %cst_11 : f32 to vector<8x1xf32>
    %17 = arith.mulf %15, %16 : vector<8x1xf32>
    %18 = vector.broadcast %17 : vector<8x1xf32> to vector<8x128xf32>
    %19 = arith.subf %11, %18 : vector<8x128xf32>
    %cst_12 = arith.constant 0.000000e+00 : f32
    %20 = vector.shape_cast %2 : vector<1x128xi1> to vector<1x128xi1>
    %21 = vector.broadcast %20 : vector<1x128xi1> to vector<8x128xi1>
    %22 = vector.broadcast %cst_12 : f32 to vector<8x128xf32>
    %23 = arith.select %21, %19, %22 : vector<8x128xi1>, vector<8x128xf32>
    %24 = arith.mulf %23, %23 : vector<8x128xf32>
    %cst_13 = arith.constant dense<0.000000e+00> : vector<8xf32>
    %25 = vector.multi_reduction <add>, %24, %cst_13 [1] : vector<8x128xf32> to vector<8xf32>
    %26 = vector.shape_cast %25 : vector<8xf32> to vector<8x1xf32>
    %cst_14 = arith.constant 3.125000e-02 : f32
    %27 = vector.broadcast %cst_14 : f32 to vector<8x1xf32>
    %28 = arith.mulf %26, %27 : vector<8x1xf32>
    %cst_15 = arith.constant 9.99999996E-13 : f32
    %29 = vector.broadcast %cst_15 : f32 to vector<8x1xf32>
    %30 = arith.addf %28, %29 : vector<8x1xf32>
    %31 = math.rsqrt %30 : vector<8x1xf32>
    %32 = vector.broadcast %31 : vector<8x1xf32> to vector<8x128xf32>
    %33 = arith.mulf %19, %32 : vector<8x128xf32>
    %34 = vector.broadcast %12 : vector<1x128xf32> to vector<8x128xf32>
    %35 = arith.mulf %33, %34 : vector<8x128xf32>
    %36 = vector.broadcast %13 : vector<1x128xf32> to vector<8x128xf32>
    %37 = arith.addf %35, %36 : vector<8x128xf32>
    %38 = arith.truncf %37 : vector<8x128xf32> to vector<8x128xbf16>
    %c0_16 = arith.constant 0 : index
    %c0_17 = arith.constant 0 : index
    %39 = vector.load %arg7[%c0_16, %c0_17] : memref<128x128xbf16, #tpu.memory_space<vmem>>, vector<128x128xbf16>
    %cst_18 = arith.constant dense<0.000000e+00> : vector<8x128xf32>
    %40 = tpu.matmul %38, %39, %cst_18 {dimension_numbers = #tpu.dot_dimension_numbers<[1], [0], [0], [1], [0, 0, 1, 1], [], []>} : vector<8x128xbf16>, vector<128x128xbf16>, vector<8x128xf32> -> vector<8x128xf32>
    %c0_19 = arith.constant 0 : index
    %c0_20 = arith.constant 0 : index
    %41 = vector.load %arg8[%c0_19, %c0_20] : memref<1x128xf32, #tpu.memory_space<vmem>>, vector<1x128xf32>
    %42 = vector.broadcast %41 : vector<1x128xf32> to vector<8x128xf32>
    %43 = arith.addf %40, %42 : vector<8x128xf32>
    %c0_21 = arith.constant 0 : index
    %c0_22 = arith.constant 0 : index
    %44 = vector.load %arg1[%c0_21, %c0_22] : memref<8x128xf32, #tpu.memory_space<vmem>>, vector<8x128xf32>
    %45 = arith.addf %44, %43 : vector<8x128xf32>
    %46 = arith.truncf %45 : vector<8x128xf32> to vector<8x128xbf16>
    %c0_23 = arith.constant 0 : index
    %c0_24 = arith.constant 0 : index
    %47 = vector.load %arg9[%c0_23, %c0_24] : memref<128x128xbf16, #tpu.memory_space<vmem>>, vector<128x128xbf16>
    %cst_25 = arith.constant dense<0.000000e+00> : vector<8x128xf32>
    %48 = tpu.matmul %46, %47, %cst_25 {dimension_numbers = #tpu.dot_dimension_numbers<[1], [0], [0], [1], [0, 0, 1, 1], [], []>} : vector<8x128xbf16>, vector<128x128xbf16>, vector<8x128xf32> -> vector<8x128xf32>
    %c0_26 = arith.constant 0 : index
    %c0_27 = arith.constant 0 : index
    %49 = vector.load %arg10[%c0_26, %c0_27] : memref<1x128xf32, #tpu.memory_space<vmem>>, vector<1x128xf32>
    %50 = vector.broadcast %49 : vector<1x128xf32> to vector<8x128xf32>
    %51 = arith.addf %48, %50 : vector<8x128xf32>
    %cst_28 = arith.constant 0.000000e+00 : f32
    %52 = vector.broadcast %cst_28 : f32 to vector<8x128xf32>
    %53 = arith.maximumf %51, %52 : vector<8x128xf32>
    %c0_29 = arith.constant 0 : index
    %c0_30 = arith.constant 0 : index
    %54 = vector.load %arg11[%c0_29, %c0_30] : memref<1x128xf32, #tpu.memory_space<vmem>>, vector<1x128xf32>
    %c0_31 = arith.constant 0 : index
    %c0_32 = arith.constant 0 : index
    %55 = vector.load %arg12[%c0_31, %c0_32] : memref<1x128xf32, #tpu.memory_space<vmem>>, vector<1x128xf32>
    %cst_33 = arith.constant dense<0.000000e+00> : vector<8xf32>
    %56 = vector.multi_reduction <add>, %53, %cst_33 [1] : vector<8x128xf32> to vector<8xf32>
    %57 = vector.shape_cast %56 : vector<8xf32> to vector<8x1xf32>
    %cst_34 = arith.constant 3.125000e-02 : f32
    %58 = vector.broadcast %cst_34 : f32 to vector<8x1xf32>
    %59 = arith.mulf %57, %58 : vector<8x1xf32>
    %60 = vector.broadcast %59 : vector<8x1xf32> to vector<8x128xf32>
    %61 = arith.subf %53, %60 : vector<8x128xf32>
    %cst_35 = arith.constant 0.000000e+00 : f32
    %62 = vector.shape_cast %2 : vector<1x128xi1> to vector<1x128xi1>
    %63 = vector.broadcast %62 : vector<1x128xi1> to vector<8x128xi1>
    %64 = vector.broadcast %cst_35 : f32 to vector<8x128xf32>
    %65 = arith.select %63, %61, %64 : vector<8x128xi1>, vector<8x128xf32>
    %66 = arith.mulf %65, %65 : vector<8x128xf32>
    %cst_36 = arith.constant dense<0.000000e+00> : vector<8xf32>
    %67 = vector.multi_reduction <add>, %66, %cst_36 [1] : vector<8x128xf32> to vector<8xf32>
    %68 = vector.shape_cast %67 : vector<8xf32> to vector<8x1xf32>
    %cst_37 = arith.constant 3.125000e-02 : f32
    %69 = vector.broadcast %cst_37 : f32 to vector<8x1xf32>
    %70 = arith.mulf %68, %69 : vector<8x1xf32>
    %cst_38 = arith.constant 9.99999996E-13 : f32
    %71 = vector.broadcast %cst_38 : f32 to vector<8x1xf32>
    %72 = arith.addf %70, %71 : vector<8x1xf32>
    %73 = math.rsqrt %72 : vector<8x1xf32>
    %74 = vector.broadcast %73 : vector<8x1xf32> to vector<8x128xf32>
    %75 = arith.mulf %61, %74 : vector<8x128xf32>
    %76 = vector.broadcast %54 : vector<1x128xf32> to vector<8x128xf32>
    %77 = arith.mulf %75, %76 : vector<8x128xf32>
    %78 = vector.broadcast %55 : vector<1x128xf32> to vector<8x128xf32>
    %79 = arith.addf %77, %78 : vector<8x128xf32>
    %80 = arith.truncf %79 : vector<8x128xf32> to vector<8x128xbf16>
    %c0_39 = arith.constant 0 : index
    %c0_40 = arith.constant 0 : index
    %81 = vector.load %arg13[%c0_39, %c0_40] : memref<128x128xbf16, #tpu.memory_space<vmem>>, vector<128x128xbf16>
    %cst_41 = arith.constant dense<0.000000e+00> : vector<8x128xf32>
    %82 = tpu.matmul %80, %81, %cst_41 {dimension_numbers = #tpu.dot_dimension_numbers<[1], [0], [0], [1], [0, 0, 1, 1], [], []>} : vector<8x128xbf16>, vector<128x128xbf16>, vector<8x128xf32> -> vector<8x128xf32>
    %c0_42 = arith.constant 0 : index
    %c0_43 = arith.constant 0 : index
    %83 = vector.load %arg14[%c0_42, %c0_43] : memref<1x128xf32, #tpu.memory_space<vmem>>, vector<1x128xf32>
    %84 = vector.broadcast %83 : vector<1x128xf32> to vector<8x128xf32>
    %85 = arith.addf %82, %84 : vector<8x128xf32>
    %c0_44 = arith.constant 0 : index
    %c0_45 = arith.constant 0 : index
    %86 = vector.load %arg15[%c0_44, %c0_45] : memref<8x128xf32, #tpu.memory_space<vmem>>, vector<8x128xf32>
    tpu.vector_store %arg15[%c0_44, %c0_45], %85 {strides = array<i32>} : memref<8x128xf32, #tpu.memory_space<vmem>>, vector<8x128xf32>,
    return
  }
  func.func @transform_0(%arg0: i32) -> (i32, i32) {
    %c0_i32 = arith.constant 0 : i32
    %c0_i32_0 = arith.constant 0 : i32
    return %arg0, %c0_i32 : i32, i32
  }
  func.func @transform_1(%arg0: i32) -> (i32, i32) {
    %c0_i32 = arith.constant 0 : i32
    %c0_i32_0 = arith.constant 0 : i32
    return %arg0, %c0_i32 : i32, i32
  }
  func.func @transform_2(%arg0: i32) -> (i32, i32) {
    %c0_i32 = arith.constant 0 : i32
    %c0_i32_0 = arith.constant 0 : i32
    %c0_i32_1 = arith.constant 0 : i32
    return %c0_i32, %c0_i32_0 : i32, i32
  }
  func.func @transform_3(%arg0: i32) -> (i32, i32) {
    %c0_i32 = arith.constant 0 : i32
    %c0_i32_0 = arith.constant 0 : i32
    %c0_i32_1 = arith.constant 0 : i32
    return %c0_i32, %c0_i32_0 : i32, i32
  }
  func.func @transform_4(%arg0: i32) -> (i32, i32) {
    %c0_i32 = arith.constant 0 : i32
    %c0_i32_0 = arith.constant 0 : i32
    %c0_i32_1 = arith.constant 0 : i32
    return %c0_i32, %c0_i32_0 : i32, i32
  }
  func.func @transform_5(%arg0: i32) -> (i32, i32) {
    %c0_i32 = arith.constant 0 : i32
    %c0_i32_0 = arith.constant 0 : i32
    %c0_i32_1 = arith.constant 0 : i32
    return %c0_i32, %c0_i32_0 : i32, i32
  }
  func.func @transform_6(%arg0: i32) -> (i32, i32) {
    %c0_i32 = arith.constant 0 : i32
    %c0_i32_0 = arith.constant 0 : i32
    %c0_i32_1 = arith.constant 0 : i32
    return %c0_i32, %c0_i32_0 : i32, i32
  }
  func.func @transform_7(%arg0: i32) -> (i32, i32) {
    %c0_i32 = arith.constant 0 : i32
    %c0_i32_0 = arith.constant 0 : i32
    %c0_i32_1 = arith.constant 0 : i32
    return %c0_i32, %c0_i32_0 : i32, i32
  }
  func.func @transform_8(%arg0: i32) -> (i32, i32) {
    %c0_i32 = arith.constant 0 : i32
    %c0_i32_0 = arith.constant 0 : i32
    %c0_i32_1 = arith.constant 0 : i32
    return %c0_i32, %c0_i32_0 : i32, i32
  }
  func.func @transform_9(%arg0: i32) -> (i32, i32) {
    %c0_i32 = arith.constant 0 : i32
    %c0_i32_0 = arith.constant 0 : i32
    %c0_i32_1 = arith.constant 0 : i32
    return %c0_i32, %c0_i32_0 : i32, i32
  }
  func.func @transform_10(%arg0: i32) -> (i32, i32) {
    %c0_i32 = arith.constant 0 : i32
    %c0_i32_0 = arith.constant 0 : i32
    %c0_i32_1 = arith.constant 0 : i32
    return %c0_i32, %c0_i32_0 : i32, i32
  }
  func.func @transform_11(%arg0: i32) -> (i32, i32) {
    %c0_i32 = arith.constant 0 : i32
    %c0_i32_0 = arith.constant 0 : i32
    %c0_i32_1 = arith.constant 0 : i32
    return %c0_i32, %c0_i32_0 : i32, i32
  }
  func.func @transform_12(%arg0: i32) -> (i32, i32) {
    %c0_i32 = arith.constant 0 : i32
    %c0_i32_0 = arith.constant 0 : i32
    %c0_i32_1 = arith.constant 0 : i32
    return %c0_i32, %c0_i32_0 : i32, i32
  }
  func.func @transform_13(%arg0: i32) -> (i32, i32) {
    %c0_i32 = arith.constant 0 : i32
    %c0_i32_0 = arith.constant 0 : i32
    %c0_i32_1 = arith.constant 0 : i32
    return %c0_i32, %c0_i32_0 : i32, i32
  }
  func.func @transform_14(%arg0: i32) -> (i32, i32) {
    %c0_i32 = arith.constant 0 : i32
    %c0_i32_0 = arith.constant 0 : i32
    return %arg0, %c0_i32 : i32, i32
  }
}

</mosaic_0001>

<bundles_post_ra>
// kernel: tpu_custom_call.1
= control target key start
LH: loop header
LB: loop body
LE: loop exit
PB: predicated region body
PF: predicated region fallthrough
CT: control target
= control target key end

     0   :  { %s2008_s0 = inlined_call_operand.hbm [shape: f32[16,128], index: 0, kind: input, shape index: {}]   ;;  %s2009_s1 = inlined_call_operand.hbm [shape: f32[16,128], index: 1, kind: input, shape index: {}]   ;;  %s2010_s2 = inlined_call_operand.hbm [shape: bf16[128,128], index: 2, kind: input, shape index: {}]   ;;  %s2011_s3 = inlined_call_operand.vmem [shape: f32[1,128], index: 3, kind: input, shape index: {}]   ;;  %s2012_s4 = inlined_call_operand.vmem [shape: f32[1,128], index: 4, kind: input, shape index: {}]   ;;  %s2013_s5 = inlined_call_operand.vmem [shape: f32[1,128], index: 5, kind: input, shape index: {}]   ;;  %s2014_s6 = inlined_call_operand.hbm [shape: bf16[128,128], index: 6, kind: input, shape index: {}]   ;;  %s2015_s7 = inlined_call_operand.vmem [shape: f32[1,128], index: 7, kind: input, shape index: {}]   ;;  %s2016_s8 = inlined_call_operand.hbm [shape: bf16[128,128], index: 8, kind: input, shape index: {}]   ;;  %s2017_s9 = inlined_call_operand.vmem [shape: f32[1,128], index: 9, kind: input, shape index: {}]   ;;  %s2018_s10 = inlined_call_operand.vmem [shape: f32[1,128], index: 10, kind: input, shape index: {}]   ;;  %s2019_s11 = inlined_call_operand.vmem [shape: f32[1,128], index: 11, kind: input, shape index: {}]   ;;  %s2020_s12 = inlined_call_operand.hbm [shape: bf16[128,128], index: 12, kind: input, shape index: {}]   ;;  %s2021_s13 = inlined_call_operand.vmem [shape: f32[1,128], index: 13, kind: input, shape index: {}]   ;;  %s2022_s14 = inlined_call_operand.hbm [shape: f32[16,128], index: 14, kind: output, shape index: {}]  }
   0x1   :  { %2032 = sst [smem:[#allocation27_spill]] %s2010_s2 }
   0x2   :  { %2033 = sst [smem:[#allocation28_spill]] %s2014_s6 }
   0x3   :  { %2034 = sst [smem:[#allocation29_spill]] %s2016_s8 }
   0x4   :  { %2035 = sst [smem:[#allocation30_spill]] %s2020_s12 }
   0x5   :  { %2036 = sst [smem:[#allocation31_spill]] %s2021_s13 }
   0x6   :  { %2037 = sst [smem:[#allocation32_spill]] %s2022_s14 }
   0x7   :  { %19 = vsyncpa [#allocation3], 0 }
   0x8   :  { %21 = vsyncpa [#allocation3 + $0x1], 0 }
   0x9   :  { %22 = vsyncpa [#allocation6], 0 }
   0xa   :  { %24 = vsyncpa [#allocation6 + $0x1], 0 }
   0xb   :  { %25 = vsyncpa [#allocation9], 0 }
   0xc   :  { %26 = vsyncpa [#allocation12], 0 }
   0xd   :  { %27 = vsyncpa [#allocation4], 0 }
   0xe   :  { %29 = vsyncpa [#allocation4 + $0x1], 0  ;;  %s1772_s29 = smov 0   ;;  %s1774_s30 = smov 0  }
   0xf   :  { %s1776_s15 = smov 0   ;;  %s1778_s16 = smov 0  }
  0x10 LB: > { %2038 = sst [smem:[#allocation20_spill]] %s1677_s29  ;;  %s1796_s20 = sadd.s32 4294967295, %s1689_s16   ;;  %s1689_s16 = sphi %s1778_s16, %s2063_s16   ;;  %s1685_s15 = sphi %s1776_s15, %s2065_s15   ;;  %s1681_s30 = sphi %s1774_s30, %s2067_s30   ;;  %s1677_s29 = sphi %s1772_s29, %s2066_s29  }
  0x11   : > { %2039 = sst [smem:[#allocation21_spill]] %s1685_s15  ;;  %p1139_p0 = scmp.ge.s32.totalorder %s1689_s16, 1 }
  0x12   : > { %2040 = sst [smem:[#allocation22_spill]] %s1689_s16  ;;  %p56_p1 = scmp.eq.s32.totalorder %s1796_s20, 0 }
  0x13   : > { %s2041_s2 = sld [smem:[#allocation27_spill]]  ;;  %p370_p2 = scmp.lt.s32.totalorder %s1689_s16, 3 }
  0x14   : > { %s1691_s22 = smov [#allocation7]   ;;  %s2043_s6 = sld [smem:[#allocation28_spill]] }
  0x15   : > { %p1801_p3 = pnand %p1139_p0, %p370_p2  ;;  %s383_s23 = sshll.u32 %s1691_s22, 4  ;;  %s384_s23 = int_to_ptr.vmem [resolvable:$true] %s383_s23 }
  0x16   : > { %s2045_s8 = sld [smem:[#allocation29_spill]]  ;;  %s1692_s22 = smov [#allocation8]  }
  0x17   : > { %p1343_p4 = pneg %p1801_p3  ;;  %s1693_s13 = smov 64  }
  0x18   : > { %s1694_s24 = smov 4   ;;  %s2046_s12 = sld [smem:[#allocation30_spill]] }
  0x19   : > { %s381_s19 = sshll.u32 %s2041_s2, 4  ;;  %p1813_p6 = pnand %p1343_p4, %p56_p1  ;;  %s382_s19 = int_to_ptr.hbm [resolvable:$true] %s381_s19 }
  0x1a   : > { %s404_s26 = sshll.u32 %s2043_s6, 4  ;;  %s406_s2 = sshll.u32 %s1692_s22, 4  ;;  %s405_s26 = int_to_ptr.hbm [resolvable:$true] %s404_s26  ;;  %s407_s2 = int_to_ptr.vmem [resolvable:$true] %s406_s2 }
  0x1b   : > { %1346 = dma.hbm_to_vmem [thread:$0]  (!%p1813_p6), %s382_s19, 1024, %s384_s23, [#allocation6], %s1693_s13, %s1693_s13, %s1694_s24  }
  0x1c   : > { %s421_s18 = sshll.u32 %s2045_s8, 4  ;;  %s1695_s17 = smov [#allocation10]   ;;  %s422_s18 = int_to_ptr.hbm [resolvable:$true] %s421_s18 }
  0x1d   : > { %1349 = dma.hbm_to_vmem [thread:$0]  (!%p1813_p6), %s405_s26, 1024, %s407_s2, [#allocation9], %s1693_s13, %s1693_s13, %s1694_s24  }
  0x1e   : > { %s444_s28 = sshll.u32 %s2046_s12, 4  ;;  %s423_s22 = sshll.u32 %s1695_s17, 4  ;;  %s445_s28 = int_to_ptr.hbm [resolvable:$true] %s444_s28  ;;  %s424_s22 = int_to_ptr.vmem [resolvable:$true] %s423_s22 }
  0x1f   : > { %1352 = dma.hbm_to_vmem [thread:$0]  (!%p1813_p6), %s422_s18, 1024, %s424_s22, [#allocation9], %s1693_s13, %s1693_s13, %s1694_s24  }
  0x20   : > { %s1696_s19 = smov [#allocation11]   ;;  %s1138_s6 = sadd.s32 4294967294, %s1689_s16  }
  0x21   : > { %s446_s2 = sshll.u32 %s1696_s19, 4  ;;  %s1833_s23 = sadd.s32 1, %s1689_s16   ;;  %s447_s2 = int_to_ptr.vmem [resolvable:$true] %s446_s2 }
  0x22   : > { %1355 = dma.hbm_to_vmem [thread:$0]  (!%p1813_p6), %s445_s28, 1024, %s447_s2, [#allocation12], %s1693_s13, %s1693_s13, %s1694_s24  }
  0x23   : > { %2047 = sst [smem:[#allocation23_spill]] %s1833_s23  ;;  %s39_s26 = ssub.s32 %s1689_s16, %s1833_s23 }
  0x24   : > { %s42_s25 = sadd.s32 1, %s1685_s15  ;;  %p40_p7 = scmp.eq.s32.totalorder %s39_s26, 0 }
  0x25   : > { %p49_p8 = scmp.ne.s32.totalorder %s1685_s15, %s1681_s30  ;;  %p50_p9 = scmp.eq.s32.totalorder %s1689_s16, 0 }
  0x26   : > { %p55_p10 = scmp.ne.s32.totalorder %s1681_s30, %s1677_s29  ;;  %p357_p13 = scmp.eq.s32.totalorder %s1796_s20, 1 }
  0x27   : > { %s1844_s18 = scalar_select %p40_p7, %s1685_s15, %s42_s25  }
  0x28   : > { %p1846_p11 = por %p50_p9, %p49_p8  ;;  %p1852_p12 = por %p56_p1, %p55_p10 }
  0x29   : > { %2048 = sst [smem:[#allocation24_spill]] %s1844_s18  ;;  %p363_p0 = scmp.eq.s32.totalorder %s1138_s6, 1 }
  0x2a   : > { %p1371_p2 = scmp.lt.s32.totalorder %s1689_s16, 2  ;;  %s463_s27 = sand.u32 1, %s1685_s15  }
  0x2b   : > { %p1859_p4 = por %p357_p13, %p49_p8  ;;  %p1863_p6 = por %p363_p0, %p55_p10 }
  0x2c   : > { %s1867_s22 = sshll.u32 %s463_s27, 3  ;;  %s1146_s19 = sshll.u32 %s1689_s16, 3 }
  0x2d   : > { %s2051_s24 = scalar_select %p1859_p4, 1, 0 }
  0x2e   : > { %s2053_s28 = scalar_select %p1863_p6, 1, 0 }
  0x2f   : > { %2052 = sst [smem:[#allocation25_spill]] %s2051_s24  ;;  %s471_s25 = scalar_lea.hbm %s2008_s0, %s1146_s19 }
  0x30   : > { %2054 = sst [smem:[#allocation26_spill]] %s2053_s28  ;;  %s467_s8 = scalar_lea.vmem [#allocation2], %s1867_s22 }
  0x31   : > { %s475_s6 = sshll.u32 %s467_s8, 4  ;;  %s473_s12 = sshll.u32 %s471_s25, 4  ;;  %s476_s6 = int_to_ptr.vmem [resolvable:$true] %s475_s6  ;;  %s474_s12 = int_to_ptr.hbm [resolvable:$true] %s473_s12 }
  0x32   : > { %p1876_p7 = pnand %p1371_p2, %p1846_p11  ;;  %s490_s28 = scalar_lea.hbm %s2009_s1, %s1146_s19 }
  0x33   : > { %s482_s29 = sand.u32 1, %s1689_s16   ;;  %s464_s24 = scalar_lea.sflag [#allocation3], %s463_s27 }
  0x34   : > { %s1547_s2 = sshra.s32 %s474_s12, 4  ;;  %p1551_p9 = pneg %p1876_p7  ;;  %s1548_s2 = int_to_ptr.hbm [resolvable:$true] %s1547_s2 }
  0x35   : > { %s1549_s26 = scalar_lea.hbm %s1548_s2, 8  ;;  %s1554_s25 = scalar_lea.hbm %s2008_s0, 16 }
  0x36   : > { %p1550_p8 = scmp.ne.s32.totalorder %s1548_s2, %s1549_s26  ;;  %p1555_p13 = scmp.lt.s32.totalorder %s1548_s2, %s2008_s0 }
  0x37   : > { %p1556_p0 = scmp.lt.s32.totalorder %s1554_s25, %s1549_s26 }
  0x38   : > { %p1552_p10 = pnand %p1551_p9, %p1550_p8 }
  0x39   : > { %p1557_p2 = por %p1556_p0, %p1555_p13 }
  0x3a   : > { %p1553_p11 = pneg %p1552_p10 }
  0x3c   : > { %p1558_p5 = pnand %p1557_p2, %p1553_p11 }
  0x3e   : > { %1561 = shalt.err (!%p1558_p5)
}
  0x3f   : > { %1359 = dma.hbm_to_vmem [thread:$0]  (!%p1876_p7), %s474_s12, 128, %s476_s6, %s464_s24  }
  0x40   : > { %s492_s27 = sshll.u32 %s490_s28, 4  ;;  %s486_s19 = scalar_lea.vmem [#allocation5], %s1867_s22  ;;  %s493_s27 = int_to_ptr.hbm [resolvable:$true] %s492_s27 }
  0x41   : > { %s494_s16 = sshll.u32 %s486_s19, 4  ;;  %s483_s8 = scalar_lea.sflag [#allocation6], %s482_s29  ;;  %s495_s16 = int_to_ptr.vmem [resolvable:$true] %s494_s16 }
  0x42   : > { %s1577_s17 = sshra.s32 %s493_s27, 4  ;;  %s1584_s25 = scalar_lea.hbm %s2009_s1, 16  ;;  %s1578_s17 = int_to_ptr.hbm [resolvable:$true] %s1577_s17 }
  0x43   : > { %s1579_s14 = scalar_lea.hbm %s1578_s17, 8  ;;  %p1585_p5 = scmp.lt.s32.totalorder %s1578_s17, %s2009_s1 }
  0x44   : > { %p1580_p8 = scmp.ne.s32.totalorder %s1578_s17, %s1579_s14  ;;  %p1586_p13 = scmp.lt.s32.totalorder %s1584_s25, %s1579_s14 }
  0x46   : > { %p1582_p10 = pnand %p1580_p8, %p1551_p9  ;;  %p1587_p0 = por %p1586_p13, %p1585_p5 }
  0x48   : > { %p1583_p11 = pneg %p1582_p10 }
  0x4a   : > { %p1588_p2 = pnand %p1587_p0, %p1583_p11 }
  0x4c   : > { %1591 = shalt.err (!%p1588_p2)
}
  0x4d   : > { %1362 = dma.hbm_to_vmem [thread:$0]  (!%p1876_p7), %s493_s27, 128, %s495_s16, %s483_s8  }
  0x4e   : > { %503 = sbr.rel (%p1801_p3) target bundleno = 1201 (0x4b1), region = 76  ;;  %s1912_s29 = sand.u32 (!%p1801_p3), 1, %s1681_s30  }
  0x4f   : > { %s1915_s24 = sshll.u32 (!%p1801_p3), %s1912_s29, 3  ;;  %s506_s28 = scalar_lea.sflag (!%p1801_p3), [#allocation3], %s1912_s29 }
  0x50   : > { %s509_s14 = scalar_lea.vmem (!%p1801_p3), [#allocation2], %s1915_s24 }
  0x53   : > { %1652 = dma.done.wait (%p1852_p12), %s506_s28, 128  }
  0x54   : > { %1654 = vsyncadd (%p1852_p12), %s506_s28, 4294967168  ;;  %s515_s16 = sand.u32 1, %s1796_s20   ;;  %s519_s18 = scalar_lea.vmem [#allocation5], %s1915_s24 }
  0x55   : > { %s516_s21 = scalar_lea.sflag [#allocation6], %s515_s16 }
  0x56   : > { %1656 = dma.done.wait (%p1852_p12), %s516_s21, 128  }
  0x57   : > { %1658 = vsyncadd (%p1852_p12), %s516_s21, 4294967168 }
  0x58   : > { %1660 = dma.done.wait (%p56_p1), [#allocation6], 1024  }
  0x59   : > { %1662 = vsyncadd (%p56_p1), [#allocation6], 4294966272 }
  0x5a   : > { %1664 = dma.done.wait (%p56_p1), [#allocation9], 2048  }
  0x5b   : > { %1666 = vsyncadd (%p56_p1), [#allocation9], 4294965248 }
  0x5c   : > { %1668 = dma.done.wait (%p56_p1), [#allocation12], 1024  }
  0x5d   : > { %1670 = vsyncadd (%p56_p1), [#allocation12], 4294966272  ;;  %v1296_v0 = vld [vmem:[#allocation7 + $0x38] sm:$0xff]  ;;  %v1295_v1 = vld [vmem:[#allocation7 + $0x30] sm:$0xff]  ;;  %v590_v16 = vlaneseq  ;;  %s2058_s27 = sld [smem:[#allocation31_spill]]  ;;  %s589_s19 = scalar_lea.vmem [#allocation13], %s1915_s24 }
  0x5e   : > { %663 = vmatpush.bf16.msra.mxu0 %v1296_v0  ;;  %v1294_v2 = vld [vmem:[#allocation7 + $0x28] sm:$0xff]  ;;  %v1293_v3 = vld [vmem:[#allocation7 + $0x20] sm:$0xff]  ;;  %v1292_v4 = vld [vmem:[#allocation7 + $0x18] sm:$0xff]  ;;  %s1004_s8 = sshll.u32 %s589_s19, 4  ;;  %s992_s2 = scalar_lea.sflag [#allocation4], %s1912_s29  ;;  %s1005_s8 = int_to_ptr.vmem [resolvable:$true] %s1004_s8 }
  0x5f   : > { %v1291_v5 = vld [vmem:[#allocation7 + $0x10] sm:$0xff]  ;;  %v1290_v6 = vld [vmem:[#allocation7 + $0x8] sm:$0xff]  ;;  %v1289_v7 = vld [vmem:[#allocation7] sm:$0xff]  ;;  %v1944_v17 = vand.u32 127, %v590_v16 }
  0x60   : > { %v593_v8 = vld [vmem:[%s519_s18] sm:$0xff]  ;;  %v1415_v10 = vld [vmem:[%s2011_s3] ss:$0 sm:$0xff]  ;;  %v1302_v24 = vld [vmem:[#allocation8 + $0x28] sm:$0xff]  ;;  %s2056_s18 = sld [smem:[#allocation32_spill]] }
  0x61   : > { %v594_v9 = vpack.c.bf16 %v593_v8, %v593_v8  ;;  %v1304_v15 = vld [vmem:[#allocation8 + $0x38] sm:$0xff]  ;;  %vm592_vm0 = vcmp.lt.s32.totalorder %v1944_v17, 32  ;;  %v1303_v23 = vld [vmem:[#allocation8 + $0x30] sm:$0xff]  ;;  %v1301_v25 = vld [vmem:[#allocation8 + $0x20] sm:$0xff] }
  0x62   : > { %664 = vmatpush.bf16.msra.mxu0 %v1295_v1  ;;  %779 = vmatpush.bf16.msra.mxu1 %v1304_v15  ;;  %v1300_v26 = vld [vmem:[#allocation8 + $0x18] sm:$0xff]  ;;  %v1299_v27 = vld [vmem:[#allocation8 + $0x10] sm:$0xff]  ;;  %v1298_v28 = vld [vmem:[#allocation8 + $0x8] sm:$0xff] }
  0x63   : > { %v1297_v29 = vld [vmem:[#allocation8] sm:$0xff]  ;;  %v1312_v30 = vld [vmem:[#allocation10 + $0x38] sm:$0xff]  ;;  %v1311_v33 = vld [vmem:[#allocation10 + $0x30] sm:$0xff] }
  0x64   : > { %863 = vmatpush.bf16.msra.mxu2 %v1312_v30  ;;  %v1310_v35 = vld [vmem:[#allocation10 + $0x28] sm:$0xff]  ;;  %v1309_v36 = vld [vmem:[#allocation10 + $0x20] sm:$0xff]  ;;  %v1308_v39 = vld [vmem:[#allocation10 + $0x18] sm:$0xff] }
  0x65   : > { %v1307_v42 = vld [vmem:[#allocation10 + $0x10] sm:$0xff]  ;;  %v1416_v45 = vld [vmem:[%s2012_s4] ss:$0 sm:$0xff]  ;;  %v1306_v52 = vld [vmem:[#allocation10 + $0x8] sm:$0xff] }
  0x66   : > { %665 = vmatpush.bf16.msra.mxu0 %v1294_v2  ;;  %780 = vmatpush.bf16.msra.mxu1 %v1303_v23  ;;  %v1417_v48 = vld [vmem:[%s2013_s5] ss:$0 sm:$0xff]  ;;  %v1320_v2 = vld [vmem:[#allocation11 + $0x38] sm:$0xff]  ;;  %v1319_v8 = vld [vmem:[#allocation11 + $0x30] sm:$0xff]  ;;  %s1627_s12 = scalar_lea.hbm %s2056_s18, 16 }
  0x67   : > { %v1305_v53 = vld [vmem:[#allocation10] sm:$0xff]  ;;  %977 = vmatpush.bf16.msra.mxu3 %v1320_v2 }
  0x68   : > { %864 = vmatpush.bf16.msra.mxu2 %v1311_v33  ;;  %v1418_v54 = vld [vmem:[%s2015_s7] ss:$0 sm:$0xff] }
  0x69   : > { %v792_v56 = vld [vmem:[%s509_s14] sm:$0xff]  ;;  %s1286_s14 = sshll.u32 %s1796_s20, 3 }
  0x6a   : > { %666 = vmatpush.bf16.msra.mxu0 %v1293_v3  ;;  %781 = vmatpush.bf16.msra.mxu1 %v1302_v24  ;;  %v1419_v61 = vld [vmem:[%s2017_s9] ss:$0 sm:$0xff]  ;;  %s1002_s22 = scalar_lea.hbm %s2056_s18, %s1286_s14 }
  0x6b   : > { %978 = vmatpush.bf16.msra.mxu3 %v1319_v8  ;;  %v1420_v24 = vld [vmem:[%s2018_s10] ss:$0 sm:$0xff]  ;;  %s1006_s17 = sshll.u32 %s1002_s22, 4  ;;  %s1007_s17 = int_to_ptr.hbm [resolvable:$true] %s1006_s17 }
  0x6c   : > { %865 = vmatpush.bf16.msra.mxu2 %v1310_v35  ;;  %s1621_s26 = sshra.s32 %s1007_s17, 4  ;;  %s1622_s26 = int_to_ptr.hbm [resolvable:$true] %s1621_s26 }
  0x6d   : > { %s1623_s20 = scalar_lea.hbm %s1622_s26, 8  ;;  %p1628_p7 = scmp.lt.s32.totalorder %s1622_s26, %s2056_s18 }
  0x6e   : > { %667 = vmatpush.bf16.msra.mxu0 %v1292_v4  ;;  %782 = vmatpush.bf16.msra.mxu1 %v1301_v25  ;;  %p1624_p1 = scmp.ne.s32.totalorder %s1622_s26, %s1623_s20  ;;  %p1629_p9 = scmp.lt.s32.totalorder %s1627_s12, %s1623_s20 }
  0x70   : > { %866 = vmatpush.bf16.msra.mxu2 %v1309_v36  ;;  %p1625_p3 = pnand %p1624_p1, %p1859_p4  ;;  %p1630_p8 = por %p1629_p9, %p1628_p7 }
  0x72   : > { %668 = vmatpush.bf16.msra.mxu0 %v1291_v5  ;;  %783 = vmatpush.bf16.msra.mxu1 %v1300_v26  ;;  %p1626_p12 = pneg %p1625_p3 }
  0x74   : > { %867 = vmatpush.bf16.msra.mxu2 %v1308_v39  ;;  %p1631_p10 = pnand %p1630_p8, %p1626_p12 }
  0x76   : > { %669 = vmatpush.bf16.msra.mxu0 %v1290_v6  ;;  %784 = vmatpush.bf16.msra.mxu1 %v1299_v27  ;;  %v1421_v27 = vld [vmem:[%s2019_s11] ss:$0 sm:$0xff] }
  0x78   : > { %868 = vmatpush.bf16.msra.mxu2 %v1307_v42 }
  0x7a   : > { %670 = vmatpush.bf16.msra.mxu0 %v1289_v7  ;;  %785 = vmatpush.bf16.msra.mxu1 %v1298_v28 }
  0x7c   : > { %869 = vmatpush.bf16.msra.mxu2 %v1306_v52 }
  0x7d   : > { %671 = vmatmul.bf16.vlgmr.msra.gmra.mxu0 %v594_v9  ;;  %v1318_v9 = vld [vmem:[#allocation11 + $0x28] sm:$0xff] }
  0x7e   : > { %786 = vmatpush.bf16.msra.mxu1 %v1297_v29  ;;  %979 = vmatpush.bf16.msra.mxu3 %v1318_v9 }
  0x80   : > { %870 = vmatpush.bf16.msra.mxu2 %v1305_v53 }
  0xfa   : > { %v672_v11 = vpop.f32.mrf.mxu0 }
  0xfb   : > { %v673_v12 = vadd.f32 %v1415_v10, %v672_v11  ;;  %v1317_v10 = vld [vmem:[#allocation11 + $0x20] sm:$0xff]  ;;  %v1316_v11 = vld [vmem:[#allocation11 + $0x18] sm:$0xff] }
  0xfc   : > { %980 = vmatpush.bf16.msra.mxu3 %v1317_v10 }
  0xfd   : > { %v676_v13 = vmax.f32 %v673_v12, 0.0  ;;  %v1315_v12 = vld [vmem:[#allocation11 + $0x10] sm:$0xff] }
  0xff   : > { %679 = vadd.xlane.f32.xlu0 %v676_v13 }
 0x100   : > { %981 = vmatpush.bf16.msra.mxu3 %v1316_v11 }
 0x102   : > { %v674_v14 = vpop.f32.mrf.mxu0 }
 0x103   : > { %v1313_v14 = vld [vmem:[#allocation11] sm:$0xff] }
 0x104   : > { %982 = vmatpush.bf16.msra.mxu3 %v1315_v12 }
 0x172   : > { %v680_v18 = vpop.xlane.xlu0 %679 }
 0x173   : > { %v681_v19 = vmul.f32 0.03125, %v680_v18 }
 0x175   : > { %v682_v20 = vsub.f32 %v676_v13, %v681_v19  ;;  %v1314_v13 = vld [vmem:[#allocation11 + $0x8] sm:$0xff] }
 0x176   : > { %983 = vmatpush.bf16.msra.mxu3 %v1314_v13 }
 0x177   : > { %v685_v21 = vsel %vm592_vm0, %v682_v20, 0.0 }
 0x178   : > { %v686_v22 = vmul.f32 %v685_v21, %v685_v21 }
 0x17a   : > { %687 = vadd.xlane.f32.xlu0 %v686_v22  ;;  %984 = vmatpush.bf16.msra.mxu3 %v1313_v14 }
 0x1ed   : > { %v688_v31 = vpop.xlane.xlu0 %687 }
 0x1ee   : > { %v689_v32 = vmul.f32 0.03125, %v688_v31  ;;  %v1422_v31 = vld [vmem:[%s2058_s27] ss:$0 sm:$0xff] }
 0x1f0   : > { %v690_v34 = vadd.f32 1e-12, %v689_v32 }
 0x1f2   : > { %1423 = vrsqrt.f32 %v690_v34  ;;  %vm697_vm2 = vweird.f32 %v690_v34 }
 0x1f8   : > { %v1424_v37 = vpop.eup %1423 }
 0x1f9   : > { %v692_v38 = vmul.f32 %v1424_v37, %v690_v34  ;;  %vm698_vm1 = vweird.f32 %v1424_v37 }
 0x1fa   : > { %vm699_vm3 = vmor %vm697_vm2, %vm698_vm1 }
 0x1fb   : > { %v693_v40 = vmul.f32 %v1424_v37, %v692_v38 }
 0x1fd   : > { %v694_v41 = vmul.f32 0.5, %v693_v40 }
 0x1ff   : > { %v695_v43 = vsub.f32 1.5, %v694_v41 }
 0x201   : > { %v696_v44 = vmul.f32 %v1424_v37, %v695_v43 }
 0x203   : > { %v700_v46 = vsel %vm699_vm3, %v1424_v37, %v696_v44 }
 0x204   : > { %v701_v47 = vmul.f32 %v700_v46, %v682_v20 }
 0x206   : > { %v705_v49 = vmul.f32 %v1416_v45, %v701_v47 }
 0x208   : > { %v709_v50 = vadd.f32 %v1417_v48, %v705_v49 }
 0x20a   : > { %v710_v51 = vpack.c.bf16 %v709_v50, %v709_v50 }
 0x20c   : > { %787 = vmatmul.bf16.vlgmr.msra.gmra.mxu1 %v710_v51 }
 0x289   : > { %v788_v55 = vpop.f32.mrf.mxu1 }
 0x28a   : > { %v789_v57 = vadd.f32 %v1418_v54, %v788_v55 }
 0x28c   : > { %v793_v58 = vadd.f32 %v792_v56, %v789_v57 }
 0x28e   : > { %v794_v59 = vpack.c.bf16 %v793_v58, %v793_v58 }
 0x290   : > { %871 = vmatmul.bf16.vlgmr.msra.gmra.mxu2 %v794_v59 }
 0x291   : > { %v790_v60 = vpop.f32.mrf.mxu1 }
 0x313   : > { %v872_v62 = vpop.f32.mrf.mxu2 }
 0x314   : > { %v873_v63 = vadd.f32 %v1419_v61, %v872_v62 }
 0x316   : > { %v876_v0 = vmax.f32 %v873_v63, 0.0 }
 0x318   : > { %879 = vadd.xlane.f32.xlu1 %v876_v0 }
 0x31b   : > { %v874_v1 = vpop.f32.mrf.mxu2 }
 0x38b   : > { %v880_v3 = vpop.xlane.xlu1 %879 }
 0x38c   : > { %v881_v4 = vmul.f32 0.03125, %v880_v3 }
 0x38e   : > { %v882_v5 = vsub.f32 %v876_v0, %v881_v4 }
 0x390   : > { %v883_v6 = vsel %vm592_vm0, %v882_v5, 0.0 }
 0x391   : > { %v884_v7 = vmul.f32 %v883_v6, %v883_v6 }
 0x393   : > { %885 = vadd.xlane.f32.xlu1 %v884_v7 }
 0x406   : > { %v886_v15 = vpop.xlane.xlu1 %885 }
 0x407   : > { %v887_v16 = vmul.f32 0.03125, %v886_v15 }
 0x409   : > { %v888_v17 = vadd.f32 1e-12, %v887_v16 }
 0x40b   : > { %1425 = vrsqrt.f32 %v888_v17  ;;  %vm895_vm5 = vweird.f32 %v888_v17 }
 0x411   : > { %v1426_v18 = vpop.eup %1425 }
 0x412   : > { %v890_v19 = vmul.f32 %v1426_v18, %v888_v17  ;;  %vm896_vm4 = vweird.f32 %v1426_v18 }
 0x413   : > { %vm897_vm6 = vmor %vm895_vm5, %vm896_vm4 }
 0x414   : > { %v891_v20 = vmul.f32 %v1426_v18, %v890_v19 }
 0x416   : > { %v892_v21 = vmul.f32 0.5, %v891_v20 }
 0x418   : > { %v893_v22 = vsub.f32 1.5, %v892_v21 }
 0x41a   : > { %v894_v23 = vmul.f32 %v1426_v18, %v893_v22 }
 0x41c   : > { %v898_v25 = vsel %vm897_vm6, %v1426_v18, %v894_v23 }
 0x41d   : > { %v899_v26 = vmul.f32 %v898_v25, %v882_v5 }
 0x41f   : > { %v903_v28 = vmul.f32 %v1420_v24, %v899_v26 }
 0x421   : > { %v907_v29 = vadd.f32 %v1421_v27, %v903_v28 }
 0x423   : > { %v908_v30 = vpack.c.bf16 %v907_v29, %v907_v29 }
 0x425   : > { %985 = vmatmul.bf16.vlgmr.msra.gmra.mxu3 %v908_v30 }
 0x4a8   : > { %v986_v32 = vpop.f32.mrf.mxu3 }
 0x4a9   : > { %v987_v33 = vadd.f32 %v1422_v31, %v986_v32 }
 0x4ab   : > { %990 = vst [vmem:[%s589_s19] sm:$0xff] %v987_v33 }
 0x4ac   : > { %1634 = shalt.err (!%p1631_p10)
}
 0x4ad   : > { %1341 = dma.vmem_to_hbm [thread:$0]  (%p1859_p4), %s1005_s8, 128, %s1007_s17, %s992_s2  }
 0x4b0   : > { %v988_v34 = vpop.f32.mrf.mxu3 }
 0x4b1 PF: > { %s2059_s29 = sld [smem:[#allocation20_spill]] }
 0x4b2   : > { %s2061_s16 = sld [smem:[#allocation22_spill]] }
 0x4b7   : > { %s1018_s21 = sand.u32 1, %s2059_s29  }
 0x4b8   : > { %p2062_p11 = scmp.ge.s32.totalorder %s2061_s16, 2  ;;  %s1019_s22 = scalar_lea.sflag [#allocation4], %s1018_s21 }
 0x4ba   : > { %p1364_p5 = pnand %p2062_p11, %p1863_p6 }
 0x4bc   : > { %p1365_p13 = pneg %p1364_p5 }
 0x4be   : > { %1672 = dma.done.wait (%p1365_p13), %s1019_s22, 128  }
 0x4bf   : > { %1674 = vsyncadd (%p1365_p13), %s1019_s22, 4294967168  ;;  %s2063_s16 = sld [smem:[#allocation23_spill]]  ;;  %s2066_s29 = smov %s1681_s30 }
 0x4c0   : > { %s2064_s6 = sld [smem:[#allocation21_spill]] }
 0x4c1   : > { %s2065_s15 = sld [smem:[#allocation24_spill]] }
 0x4c5   : > { %p32_p0 = scmp.ge.s32.totalorder %s2063_s16, 4  }
 0x4c6   : > { %s2067_s30 = smov %s2064_s6 }
 0x4c7   :  { %34 = sbr.rel (!%p32_p0) target bundleno = 16 (0x10), region = 150 }
 0x4cc   :  { %1025 = vsyncpa [#allocation3], 1 }
 0x4cd   :  { %1027 = vsyncpa [#allocation3 + $0x1], 1 }
 0x4ce   :  { %1028 = vsyncpa [#allocation6], 1 }
 0x4cf   :  { %1030 = vsyncpa [#allocation6 + $0x1], 1 }
 0x4d0   :  { %1031 = vsyncpa [#allocation9], 1 }
 0x4d1   :  { %1032 = vsyncpa [#allocation12], 1 }
 0x4d2   :  { %1033 = vsyncpa [#allocation4], 1 }
 0x4d3   :  { %1035 = vsyncpa [#allocation4 + $0x1], 1 }

// kernel: tpu_custom_call.1
= control target key start
LH: loop header
LB: loop body
LE: loop exit
PB: predicated region body
PF: predicated region fallthrough
CT: control target
= control target key end

     0   :  { %s2008_s0 = inlined_call_operand.hbm [shape: f32[16,128], index: 0, kind: input, shape index: {}]   ;;  %s2009_s1 = inlined_call_operand.hbm [shape: f32[16,128], index: 1, kind: input, shape index: {}]   ;;  %s2010_s2 = inlined_call_operand.hbm [shape: bf16[128,128], index: 2, kind: input, shape index: {}]   ;;  %s2011_s3 = inlined_call_operand.vmem [shape: f32[1,128], index: 3, kind: input, shape index: {}]   ;;  %s2012_s4 = inlined_call_operand.vmem [shape: f32[1,128], index: 4, kind: input, shape index: {}]   ;;  %s2013_s5 = inlined_call_operand.vmem [shape: f32[1,128], index: 5, kind: input, shape index: {}]   ;;  %s2014_s6 = inlined_call_operand.hbm [shape: bf16[128,128], index: 6, kind: input, shape index: {}]   ;;  %s2015_s7 = inlined_call_operand.vmem [shape: f32[1,128], index: 7, kind: input, shape index: {}]   ;;  %s2016_s8 = inlined_call_operand.hbm [shape: bf16[128,128], index: 8, kind: input, shape index: {}]   ;;  %s2017_s9 = inlined_call_operand.vmem [shape: f32[1,128], index: 9, kind: input, shape index: {}]   ;;  %s2018_s10 = inlined_call_operand.vmem [shape: f32[1,128], index: 10, kind: input, shape index: {}]   ;;  %s2019_s11 = inlined_call_operand.vmem [shape: f32[1,128], index: 11, kind: input, shape index: {}]   ;;  %s2020_s12 = inlined_call_operand.hbm [shape: bf16[128,128], index: 12, kind: input, shape index: {}]   ;;  %s2021_s13 = inlined_call_operand.vmem [shape: f32[1,128], index: 13, kind: input, shape index: {}]   ;;  %s2022_s14 = inlined_call_operand.hbm [shape: f32[16,128], index: 14, kind: output, shape index: {}]  }
   0x1   :  { %2032 = sst [smem:[#allocation27_spill]] %s2010_s2 }
   0x2   :  { %2033 = sst [smem:[#allocation28_spill]] %s2014_s6 }
   0x3   :  { %2034 = sst [smem:[#allocation29_spill]] %s2016_s8 }
   0x4   :  { %2035 = sst [smem:[#allocation30_spill]] %s2020_s12 }
   0x5   :  { %2036 = sst [smem:[#allocation31_spill]] %s2021_s13 }
   0x6   :  { %2037 = sst [smem:[#allocation32_spill]] %s2022_s14 }
   0x7   :  { %19 = vsyncpa [#allocation3], 0 }
   0x8   :  { %21 = vsyncpa [#allocation3 + $0x1], 0 }
   0x9   :  { %22 = vsyncpa [#allocation6], 0 }
   0xa   :  { %24 = vsyncpa [#allocation6 + $0x1], 0 }
   0xb   :  { %25 = vsyncpa [#allocation9], 0 }
   0xc   :  { %26 = vsyncpa [#allocation12], 0 }
   0xd   :  { %27 = vsyncpa [#allocation4], 0 }
   0xe   :  { %29 = vsyncpa [#allocation4 + $0x1], 0  ;;  %s1772_s29 = smov 0   ;;  %s1774_s30 = smov 0  }
   0xf   :  { %s1776_s15 = smov 0   ;;  %s1778_s16 = smov 0  }
  0x10 LB: > { %2038 = sst [smem:[#allocation20_spill]] %s1677_s29  ;;  %s1796_s20 = sadd.s32 4294967295, %s1689_s16   ;;  %s1689_s16 = sphi %s1778_s16, %s2063_s16   ;;  %s1685_s15 = sphi %s1776_s15, %s2065_s15   ;;  %s1681_s30 = sphi %s1774_s30, %s2067_s30   ;;  %s1677_s29 = sphi %s1772_s29, %s2066_s29  }
  0x11   : > { %2039 = sst [smem:[#allocation21_spill]] %s1685_s15  ;;  %p1139_p0 = scmp.ge.s32.totalorder %s1689_s16, 1 }
  0x12   : > { %2040 = sst [smem:[#allocation22_spill]] %s1689_s16  ;;  %p56_p1 = scmp.eq.s32.totalorder %s1796_s20, 0 }
  0x13   : > { %s2041_s2 = sld [smem:[#allocation27_spill]]  ;;  %p370_p2 = scmp.lt.s32.totalorder %s1689_s16, 3 }
  0x14   : > { %s1691_s22 = smov [#allocation7]   ;;  %s2043_s6 = sld [smem:[#allocation28_spill]] }
  0x15   : > { %p1801_p3 = pnand %p1139_p0, %p370_p2  ;;  %s383_s23 = sshll.u32 %s1691_s22, 4  ;;  %s384_s23 = int_to_ptr.vmem [resolvable:$true] %s383_s23 }
  0x16   : > { %s2045_s8 = sld [smem:[#allocation29_spill]]  ;;  %s1692_s22 = smov [#allocation8]  }
  0x17   : > { %p1343_p4 = pneg %p1801_p3  ;;  %s1693_s13 = smov 64  }
  0x18   : > { %s1694_s24 = smov 4   ;;  %s2046_s12 = sld [smem:[#allocation30_spill]] }
  0x19   : > { %s381_s19 = sshll.u32 %s2041_s2, 4  ;;  %p1813_p6 = pnand %p1343_p4, %p56_p1  ;;  %s382_s19 = int_to_ptr.hbm [resolvable:$true] %s381_s19 }
  0x1a   : > { %s404_s26 = sshll.u32 %s2043_s6, 4  ;;  %s406_s2 = sshll.u32 %s1692_s22, 4  ;;  %s405_s26 = int_to_ptr.hbm [resolvable:$true] %s404_s26  ;;  %s407_s2 = int_to_ptr.vmem [resolvable:$true] %s406_s2 }
  0x1b   : > { %1346 = dma.hbm_to_vmem [thread:$0]  (!%p1813_p6), %s382_s19, 1024, %s384_s23, [#allocation6], %s1693_s13, %s1693_s13, %s1694_s24  }
  0x1c   : > { %s421_s18 = sshll.u32 %s2045_s8, 4  ;;  %s1695_s17 = smov [#allocation10]   ;;  %s422_s18 = int_to_ptr.hbm [resolvable:$true] %s421_s18 }
  0x1d   : > { %1349 = dma.hbm_to_vmem [thread:$0]  (!%p1813_p6), %s405_s26, 1024, %s407_s2, [#allocation9], %s1693_s13, %s1693_s13, %s1694_s24  }
  0x1e   : > { %s444_s28 = sshll.u32 %s2046_s12, 4  ;;  %s423_s22 = sshll.u32 %s1695_s17, 4  ;;  %s445_s28 = int_to_ptr.hbm [resolvable:$true] %s444_s28  ;;  %s424_s22 = int_to_ptr.vmem [resolvable:$true] %s423_s22 }
  0x1f   : > { %1352 = dma.hbm_to_vmem [thread:$0]  (!%p1813_p6), %s422_s18, 1024, %s424_s22, [#allocation9], %s1693_s13, %s1693_s13, %s1694_s24  }
  0x20   : > { %s1696_s19 = smov [#allocation11]   ;;  %s1138_s6 = sadd.s32 4294967294, %s1689_s16  }
  0x21   : > { %s446_s2 = sshll.u32 %s1696_s19, 4  ;;  %s1833_s23 = sadd.s32 1, %s1689_s16   ;;  %s447_s2 = int_to_ptr.vmem [resolvable:$true] %s446_s2 }
  0x22   : > { %1355 = dma.hbm_to_vmem [thread:$0]  (!%p1813_p6), %s445_s28, 1024, %s447_s2, [#allocation12], %s1693_s13, %s1693_s13, %s1694_s24  }
  0x23   : > { %2047 = sst [smem:[#allocation23_spill]] %s1833_s23  ;;  %s39_s26 = ssub.s32 %s1689_s16, %s1833_s23 }
  0x24   : > { %s42_s25 = sadd.s32 1, %s1685_s15  ;;  %p40_p7 = scmp.eq.s32.totalorder %s39_s26, 0 }
  0x25   : > { %p49_p8 = scmp.ne.s32.totalorder %s1685_s15, %s1681_s30  ;;  %p50_p9 = scmp.eq.s32.totalorder %s1689_s16, 0 }
  0x26   : > { %p55_p10 = scmp.ne.s32.totalorder %s1681_s30, %s1677_s29  ;;  %p357_p13 = scmp.eq.s32.totalorder %s1796_s20, 1 }
  0x27   : > { %s1844_s18 = scalar_select %p40_p7, %s1685_s15, %s42_s25  }
  0x28   : > { %p1846_p11 = por %p50_p9, %p49_p8  ;;  %p1852_p12 = por %p56_p1, %p55_p10 }
  0x29   : > { %2048 = sst [smem:[#allocation24_spill]] %s1844_s18  ;;  %p363_p0 = scmp.eq.s32.totalorder %s1138_s6, 1 }
  0x2a   : > { %p1371_p2 = scmp.lt.s32.totalorder %s1689_s16, 2  ;;  %s463_s27 = sand.u32 1, %s1685_s15  }
  0x2b   : > { %p1859_p4 = por %p357_p13, %p49_p8  ;;  %p1863_p6 = por %p363_p0, %p55_p10 }
  0x2c   : > { %s1867_s22 = sshll.u32 %s463_s27, 3  ;;  %s1146_s19 = sshll.u32 %s1689_s16, 3 }
  0x2d   : > { %s2051_s24 = scalar_select %p1859_p4, 1, 0 }
  0x2e   : > { %s2053_s28 = scalar_select %p1863_p6, 1, 0 }
  0x2f   : > { %2052 = sst [smem:[#allocation25_spill]] %s2051_s24  ;;  %s471_s25 = scalar_lea.hbm %s2008_s0, %s1146_s19 }
  0x30   : > { %2054 = sst [smem:[#allocation26_spill]] %s2053_s28  ;;  %s467_s8 = scalar_lea.vmem [#allocation2], %s1867_s22 }
  0x31   : > { %s475_s6 = sshll.u32 %s467_s8, 4  ;;  %s473_s12 = sshll.u32 %s471_s25, 4  ;;  %s476_s6 = int_to_ptr.vmem [resolvable:$true] %s475_s6  ;;  %s474_s12 = int_to_ptr.hbm [resolvable:$true] %s473_s12 }
  0x32   : > { %p1876_p7 = pnand %p1371_p2, %p1846_p11  ;;  %s490_s28 = scalar_lea.hbm %s2009_s1, %s1146_s19 }
  0x33   : > { %s482_s29 = sand.u32 1, %s1689_s16   ;;  %s464_s24 = scalar_lea.sflag [#allocation3], %s463_s27 }
  0x34   : > { %s1547_s2 = sshra.s32 %s474_s12, 4  ;;  %p1551_p9 = pneg %p1876_p7  ;;  %s1548_s2 = int_to_ptr.hbm [resolvable:$true] %s1547_s2 }
  0x35   : > { %s1549_s26 = scalar_lea.hbm %s1548_s2, 8  ;;  %s1554_s25 = scalar_lea.hbm %s2008_s0, 16 }
  0x36   : > { %p1550_p8 = scmp.ne.s32.totalorder %s1548_s2, %s1549_s26  ;;  %p1555_p13 = scmp.lt.s32.totalorder %s1548_s2, %s2008_s0 }
  0x37   : > { %p1556_p0 = scmp.lt.s32.totalorder %s1554_s25, %s1549_s26 }
  0x38   : > { %p1552_p10 = pnand %p1551_p9, %p1550_p8 }
  0x39   : > { %p1557_p2 = por %p1556_p0, %p1555_p13 }
  0x3a   : > { %p1553_p11 = pneg %p1552_p10 }
  0x3c   : > { %p1558_p5 = pnand %p1557_p2, %p1553_p11 }
  0x3e   : > { %1561 = shalt.err (!%p1558_p5)
}
  0x3f   : > { %1359 = dma.hbm_to_vmem [thread:$0]  (!%p1876_p7), %s474_s12, 128, %s476_s6, %s464_s24  }
  0x40   : > { %s492_s27 = sshll.u32 %s490_s28, 4  ;;  %s486_s19 = scalar_lea.vmem [#allocation5], %s1867_s22  ;;  %s493_s27 = int_to_ptr.hbm [resolvable:$true] %s492_s27 }
  0x41   : > { %s494_s16 = sshll.u32 %s486_s19, 4  ;;  %s483_s8 = scalar_lea.sflag [#allocation6], %s482_s29  ;;  %s495_s16 = int_to_ptr.vmem [resolvable:$true] %s494_s16 }
  0x42   : > { %s1577_s17 = sshra.s32 %s493_s27, 4  ;;  %s1584_s25 = scalar_lea.hbm %s2009_s1, 16  ;;  %s1578_s17 = int_to_ptr.hbm [resolvable:$true] %s1577_s17 }
  0x43   : > { %s1579_s14 = scalar_lea.hbm %s1578_s17, 8  ;;  %p1585_p5 = scmp.lt.s32.totalorder %s1578_s17, %s2009_s1 }
  0x44   : > { %p1580_p8 = scmp.ne.s32.totalorder %s1578_s17, %s1579_s14  ;;  %p1586_p13 = scmp.lt.s32.totalorder %s1584_s25, %s1579_s14 }
  0x46   : > { %p1582_p10 = pnand %p1580_p8, %p1551_p9  ;;  %p1587_p0 = por %p1586_p13, %p1585_p5 }
  0x48   : > { %p1583_p11 = pneg %p1582_p10 }
  0x4a   : > { %p1588_p2 = pnand %p1587_p0, %p1583_p11 }
  0x4c   : > { %1591 = shalt.err (!%p1588_p2)
}
  0x4d   : > { %1362 = dma.hbm_to_vmem [thread:$0]  (!%p1876_p7), %s493_s27, 128, %s495_s16, %s483_s8  }
  0x4e   : > { %503 = sbr.rel (%p1801_p3) target bundleno = 1201 (0x4b1), region = 76  ;;  %s1912_s29 = sand.u32 (!%p1801_p3), 1, %s1681_s30  }
  0x4f   : > { %s1915_s24 = sshll.u32 (!%p1801_p3), %s1912_s29, 3  ;;  %s506_s28 = scalar_lea.sflag (!%p1801_p3), [#allocation3], %s1912_s29 }
  0x50   : > { %s509_s14 = scalar_lea.vmem (!%p1801_p3), [#allocation2], %s1915_s24 }
  0x53   : > { %1652 = dma.done.wait (%p1852_p12), %s506_s28, 128  }
  0x54   : > { %1654 = vsyncadd (%p1852_p12), %s506_s28, 4294967168  ;;  %s515_s16 = sand.u32 1, %s1796_s20   ;;  %s519_s18 = scalar_lea.vmem [#allocation5], %s1915_s24 }
  0x55   : > { %s516_s21 = scalar_lea.sflag [#allocation6], %s515_s16 }
  0x56   : > { %1656 = dma.done.wait (%p1852_p12), %s516_s21, 128  }
  0x57   : > { %1658 = vsyncadd (%p1852_p12), %s516_s21, 4294967168 }
  0x58   : > { %1660 = dma.done.wait (%p56_p1), [#allocation6], 1024  }
  0x59   : > { %1662 = vsyncadd (%p56_p1), [#allocation6], 4294966272 }
  0x5a   : > { %1664 = dma.done.wait (%p56_p1), [#allocation9], 2048  }
  0x5b   : > { %1666 = vsyncadd (%p56_p1), [#allocation9], 4294965248 }
  0x5c   : > { %1668 = dma.done.wait (%p56_p1), [#allocation12], 1024  }
  0x5d   : > { %1670 = vsyncadd (%p56_p1), [#allocation12], 4294966272  ;;  %v1296_v0 = vld [vmem:[#allocation7 + $0x38] sm:$0xff]  ;;  %v1295_v1 = vld [vmem:[#allocation7 + $0x30] sm:$0xff]  ;;  %v590_v16 = vlaneseq  ;;  %s2058_s27 = sld [smem:[#allocation31_spill]]  ;;  %s589_s19 = scalar_lea.vmem [#allocation13], %s1915_s24 }
  0x5e   : > { %663 = vmatpush.bf16.msra.mxu0 %v1296_v0  ;;  %v1294_v2 = vld [vmem:[#allocation7 + $0x28] sm:$0xff]  ;;  %v1293_v3 = vld [vmem:[#allocation7 + $0x20] sm:$0xff]  ;;  %v1292_v4 = vld [vmem:[#allocation7 + $0x18] sm:$0xff]  ;;  %s1004_s8 = sshll.u32 %s589_s19, 4  ;;  %s992_s2 = scalar_lea.sflag [#allocation4], %s1912_s29  ;;  %s1005_s8 = int_to_ptr.vmem [resolvable:$true] %s1004_s8 }
  0x5f   : > { %v1291_v5 = vld [vmem:[#allocation7 + $0x10] sm:$0xff]  ;;  %v1290_v6 = vld [vmem:[#allocation7 + $0x8] sm:$0xff]  ;;  %v1289_v7 = vld [vmem:[#allocation7] sm:$0xff]  ;;  %v1944_v17 = vand.u32 127, %v590_v16 }
  0x60   : > { %v593_v8 = vld [vmem:[%s519_s18] sm:$0xff]  ;;  %v1415_v10 = vld [vmem:[%s2011_s3] ss:$0 sm:$0xff]  ;;  %v1302_v24 = vld [vmem:[#allocation8 + $0x28] sm:$0xff]  ;;  %s2056_s18 = sld [smem:[#allocation32_spill]] }
  0x61   : > { %v594_v9 = vpack.c.bf16 %v593_v8, %v593_v8  ;;  %v1304_v15 = vld [vmem:[#allocation8 + $0x38] sm:$0xff]  ;;  %vm592_vm0 = vcmp.lt.s32.totalorder %v1944_v17, 32  ;;  %v1303_v23 = vld [vmem:[#allocation8 + $0x30] sm:$0xff]  ;;  %v1301_v25 = vld [vmem:[#allocation8 + $0x20] sm:$0xff] }
  0x62   : > { %664 = vmatpush.bf16.msra.mxu0 %v1295_v1  ;;  %779 = vmatpush.bf16.msra.mxu1 %v1304_v15  ;;  %v1300_v26 = vld [vmem:[#allocation8 + $0x18] sm:$0xff]  ;;  %v1299_v27 = vld [vmem:[#allocation8 + $0x10] sm:$0xff]  ;;  %v1298_v28 = vld [vmem:[#allocation8 + $0x8] sm:$0xff] }
  0x63   : > { %v1297_v29 = vld [vmem:[#allocation8] sm:$0xff]  ;;  %v1312_v30 = vld [vmem:[#allocation10 + $0x38] sm:$0xff]  ;;  %v1311_v33 = vld [vmem:[#allocation10 + $0x30] sm:$0xff] }
  0x64   : > { %863 = vmatpush.bf16.msra.mxu2 %v1312_v30  ;;  %v1310_v35 = vld [vmem:[#allocation10 + $0x28] sm:$0xff]  ;;  %v1309_v36 = vld [vmem:[#allocation10 + $0x20] sm:$0xff]  ;;  %v1308_v39 = vld [vmem:[#allocation10 + $0x18] sm:$0xff] }
  0x65   : > { %v1307_v42 = vld [vmem:[#allocation10 + $0x10] sm:$0xff]  ;;  %v1416_v45 = vld [vmem:[%s2012_s4] ss:$0 sm:$0xff]  ;;  %v1306_v52 = vld [vmem:[#allocation10 + $0x8] sm:$0xff] }
  0x66   : > { %665 = vmatpush.bf16.msra.mxu0 %v1294_v2  ;;  %780 = vmatpush.bf16.msra.mxu1 %v1303_v23  ;;  %v1417_v48 = vld [vmem:[%s2013_s5] ss:$0 sm:$0xff]  ;;  %v1320_v2 = vld [vmem:[#allocation11 + $0x38] sm:$0xff]  ;;  %v1319_v8 = vld [vmem:[#allocation11 + $0x30] sm:$0xff]  ;;  %s1627_s12 = scalar_lea.hbm %s2056_s18, 16 }
  0x67   : > { %v1305_v53 = vld [vmem:[#allocation10] sm:$0xff]  ;;  %977 = vmatpush.bf16.msra.mxu3 %v1320_v2 }
  0x68   : > { %864 = vmatpush.bf16.msra.mxu2 %v1311_v33  ;;  %v1418_v54 = vld [vmem:[%s2015_s7] ss:$0 sm:$0xff] }
  0x69   : > { %v792_v56 = vld [vmem:[%s509_s14] sm:$0xff]  ;;  %s1286_s14 = sshll.u32 %s1796_s20, 3 }
  0x6a   : > { %666 = vmatpush.bf16.msra.mxu0 %v1293_v3  ;;  %781 = vmatpush.bf16.msra.mxu1 %v1302_v24  ;;  %v1419_v61 = vld [vmem:[%s2017_s9] ss:$0 sm:$0xff]  ;;  %s1002_s22 = scalar_lea.hbm %s2056_s18, %s1286_s14 }
  0x6b   : > { %978 = vmatpush.bf16.msra.mxu3 %v1319_v8  ;;  %v1420_v24 = vld [vmem:[%s2018_s10] ss:$0 sm:$0xff]  ;;  %s1006_s17 = sshll.u32 %s1002_s22, 4  ;;  %s1007_s17 = int_to_ptr.hbm [resolvable:$true] %s1006_s17 }
  0x6c   : > { %865 = vmatpush.bf16.msra.mxu2 %v1310_v35  ;;  %s1621_s26 = sshra.s32 %s1007_s17, 4  ;;  %s1622_s26 = int_to_ptr.hbm [resolvable:$true] %s1621_s26 }
  0x6d   : > { %s1623_s20 = scalar_lea.hbm %s1622_s26, 8  ;;  %p1628_p7 = scmp.lt.s32.totalorder %s1622_s26, %s2056_s18 }
  0x6e   : > { %667 = vmatpush.bf16.msra.mxu0 %v1292_v4  ;;  %782 = vmatpush.bf16.msra.mxu1 %v1301_v25  ;;  %p1624_p1 = scmp.ne.s32.totalorder %s1622_s26, %s1623_s20  ;;  %p1629_p9 = scmp.lt.s32.totalorder %s1627_s12, %s1623_s20 }
  0x70   : > { %866 = vmatpush.bf16.msra.mxu2 %v1309_v36  ;;  %p1625_p3 = pnand %p1624_p1, %p1859_p4  ;;  %p1630_p8 = por %p1629_p9, %p1628_p7 }
  0x72   : > { %668 = vmatpush.bf16.msra.mxu0 %v1291_v5  ;;  %783 = vmatpush.bf16.msra.mxu1 %v1300_v26  ;;  %p1626_p12 = pneg %p1625_p3 }
  0x74   : > { %867 = vmatpush.bf16.msra.mxu2 %v1308_v39  ;;  %p1631_p10 = pnand %p1630_p8, %p1626_p12 }
  0x76   : > { %669 = vmatpush.bf16.msra.mxu0 %v1290_v6  ;;  %784 = vmatpush.bf16.msra.mxu1 %v1299_v27  ;;  %v1421_v27 = vld [vmem:[%s2019_s11] ss:$0 sm:$0xff] }
  0x78   : > { %868 = vmatpush.bf16.msra.mxu2 %v1307_v42 }
  0x7a   : > { %670 = vmatpush.bf16.msra.mxu0 %v1289_v7  ;;  %785 = vmatpush.bf16.msra.mxu1 %v1298_v28 }
  0x7c   : > { %869 = vmatpush.bf16.msra.mxu2 %v1306_v52 }
  0x7d   : > { %671 = vmatmul.bf16.vlgmr.msra.gmra.mxu0 %v594_v9  ;;  %v1318_v9 = vld [vmem:[#allocation11 + $0x28] sm:$0xff] }
  0x7e   : > { %786 = vmatpush.bf16.msra.mxu1 %v1297_v29  ;;  %979 = vmatpush.bf16.msra.mxu3 %v1318_v9 }
  0x80   : > { %870 = vmatpush.bf16.msra.mxu2 %v1305_v53 }
  0xfa   : > { %v672_v11 = vpop.f32.mrf.mxu0 }
  0xfb   : > { %v673_v12 = vadd.f32 %v1415_v10, %v672_v11  ;;  %v1317_v10 = vld [vmem:[#allocation11 + $0x20] sm:$0xff]  ;;  %v1316_v11 = vld [vmem:[#allocation11 + $0x18] sm:$0xff] }
  0xfc   : > { %980 = vmatpush.bf16.msra.mxu3 %v1317_v10 }
  0xfd   : > { %v676_v13 = vmax.f32 %v673_v12, 0.0  ;;  %v1315_v12 = vld [vmem:[#allocation11 + $0x10] sm:$0xff] }
  0xff   : > { %679 = vadd.xlane.f32.xlu0 %v676_v13 }
 0x100   : > { %981 = vmatpush.bf16.msra.mxu3 %v1316_v11 }
 0x102   : > { %v674_v14 = vpop.f32.mrf.mxu0 }
 0x103   : > { %v1313_v14 = vld [vmem:[#allocation11] sm:$0xff] }
 0x104   : > { %982 = vmatpush.bf16.msra.mxu3 %v1315_v12 }
 0x172   : > { %v680_v18 = vpop.xlane.xlu0 %679 }
 0x173   : > { %v681_v19 = vmul.f32 0.03125, %v680_v18 }
 0x175   : > { %v682_v20 = vsub.f32 %v676_v13, %v681_v19  ;;  %v1314_v13 = vld [vmem:[#allocation11 + $0x8] sm:$0xff] }
 0x176   : > { %983 = vmatpush.bf16.msra.mxu3 %v1314_v13 }
 0x177   : > { %v685_v21 = vsel %vm592_vm0, %v682_v20, 0.0 }
 0x178   : > { %v686_v22 = vmul.f32 %v685_v21, %v685_v21 }
 0x17a   : > { %687 = vadd.xlane.f32.xlu0 %v686_v22  ;;  %984 = vmatpush.bf16.msra.mxu3 %v1313_v14 }
 0x1ed   : > { %v688_v31 = vpop.xlane.xlu0 %687 }
 0x1ee   : > { %v689_v32 = vmul.f32 0.03125, %v688_v31  ;;  %v1422_v31 = vld [vmem:[%s2058_s27] ss:$0 sm:$0xff] }
 0x1f0   : > { %v690_v34 = vadd.f32 1e-12, %v689_v32 }
 0x1f2   : > { %1423 = vrsqrt.f32 %v690_v34  ;;  %vm697_vm2 = vweird.f32 %v690_v34 }
 0x1f8   : > { %v1424_v37 = vpop.eup %1423 }
 0x1f9   : > { %v692_v38 = vmul.f32 %v1424_v37, %v690_v34  ;;  %vm698_vm1 = vweird.f32 %v1424_v37 }
 0x1fa   : > { %vm699_vm3 = vmor %vm697_vm2, %vm698_vm1 }
 0x1fb   : > { %v693_v40 = vmul.f32 %v1424_v37, %v692_v38 }
 0x1fd   : > { %v694_v41 = vmul.f32 0.5, %v693_v40 }
 0x1ff   : > { %v695_v43 = vsub.f32 1.5, %v694_v41 }
 0x201   : > { %v696_v44 = vmul.f32 %v1424_v37, %v695_v43 }
 0x203   : > { %v700_v46 = vsel %vm699_vm3, %v1424_v37, %v696_v44 }
 0x204   : > { %v701_v47 = vmul.f32 %v700_v46, %v682_v20 }
 0x206   : > { %v705_v49 = vmul.f32 %v1416_v45, %v701_v47 }
 0x208   : > { %v709_v50 = vadd.f32 %v1417_v48, %v705_v49 }
 0x20a   : > { %v710_v51 = vpack.c.bf16 %v709_v50, %v709_v50 }
 0x20c   : > { %787 = vmatmul.bf16.vlgmr.msra.gmra.mxu1 %v710_v51 }
 0x289   : > { %v788_v55 = vpop.f32.mrf.mxu1 }
 0x28a   : > { %v789_v57 = vadd.f32 %v1418_v54, %v788_v55 }
 0x28c   : > { %v793_v58 = vadd.f32 %v792_v56, %v789_v57 }
 0x28e   : > { %v794_v59 = vpack.c.bf16 %v793_v58, %v793_v58 }
 0x290   : > { %871 = vmatmul.bf16.vlgmr.msra.gmra.mxu2 %v794_v59 }
 0x291   : > { %v790_v60 = vpop.f32.mrf.mxu1 }
 0x313   : > { %v872_v62 = vpop.f32.mrf.mxu2 }
 0x314   : > { %v873_v63 = vadd.f32 %v1419_v61, %v872_v62 }
 0x316   : > { %v876_v0 = vmax.f32 %v873_v63, 0.0 }
 0x318   : > { %879 = vadd.xlane.f32.xlu1 %v876_v0 }
 0x31b   : > { %v874_v1 = vpop.f32.mrf.mxu2 }
 0x38b   : > { %v880_v3 = vpop.xlane.xlu1 %879 }
 0x38c   : > { %v881_v4 = vmul.f32 0.03125, %v880_v3 }
 0x38e   : > { %v882_v5 = vsub.f32 %v876_v0, %v881_v4 }
 0x390   : > { %v883_v6 = vsel %vm592_vm0, %v882_v5, 0.0 }
 0x391   : > { %v884_v7 = vmul.f32 %v883_v6, %v883_v6 }
 0x393   : > { %885 = vadd.xlane.f32.xlu1 %v884_v7 }
 0x406   : > { %v886_v15 = vpop.xlane.xlu1 %885 }
 0x407   : > { %v887_v16 = vmul.f32 0.03125, %v886_v15 }
 0x409   : > { %v888_v17 = vadd.f32 1e-12, %v887_v16 }
 0x40b   : > { %1425 = vrsqrt.f32 %v888_v17  ;;  %vm895_vm5 = vweird.f32 %v888_v17 }
 0x411   : > { %v1426_v18 = vpop.eup %1425 }
 0x412   : > { %v890_v19 = vmul.f32 %v1426_v18, %v888_v17  ;;  %vm896_vm4 = vweird.f32 %v1426_v18 }
 0x413   : > { %vm897_vm6 = vmor %vm895_vm5, %vm896_vm4 }
 0x414   : > { %v891_v20 = vmul.f32 %v1426_v18, %v890_v19 }
 0x416   : > { %v892_v21 = vmul.f32 0.5, %v891_v20 }
 0x418   : > { %v893_v22 = vsub.f32 1.5, %v892_v21 }
 0x41a   : > { %v894_v23 = vmul.f32 %v1426_v18, %v893_v22 }
 0x41c   : > { %v898_v25 = vsel %vm897_vm6, %v1426_v18, %v894_v23 }
 0x41d   : > { %v899_v26 = vmul.f32 %v898_v25, %v882_v5 }
 0x41f   : > { %v903_v28 = vmul.f32 %v1420_v24, %v899_v26 }
 0x421   : > { %v907_v29 = vadd.f32 %v1421_v27, %v903_v28 }
 0x423   : > { %v908_v30 = vpack.c.bf16 %v907_v29, %v907_v29 }
 0x425   : > { %985 = vmatmul.bf16.vlgmr.msra.gmra.mxu3 %v908_v30 }
 0x4a8   : > { %v986_v32 = vpop.f32.mrf.mxu3 }
 0x4a9   : > { %v987_v33 = vadd.f32 %v1422_v31, %v986_v32 }
 0x4ab   : > { %990 = vst [vmem:[%s589_s19] sm:$0xff] %v987_v33 }
 0x4ac   : > { %1634 = shalt.err (!%p1631_p10)
}
 0x4ad   : > { %1341 = dma.vmem_to_hbm [thread:$0]  (%p1859_p4), %s1005_s8, 128, %s1007_s17, %s992_s2  }
 0x4b0   : > { %v988_v34 = vpop.f32.mrf.mxu3 }
 0x4b1 PF: > { %s2059_s29 = sld [smem:[#allocation20_spill]] }
 0x4b2   : > { %s2061_s16 = sld [smem:[#allocation22_spill]] }
 0x4b7   : > { %s1018_s21 = sand.u32 1, %s2059_s29  }
 0x4b8   : > { %p2062_p11 = scmp.ge.s32.totalorder %s2061_s16, 2  ;;  %s1019_s22 = scalar_lea.sflag [#allocation4], %s1018_s21 }
 0x4ba   : > { %p1364_p5 = pnand %p2062_p11, %p1863_p6 }
 0x4bc   : > { %p1365_p13 = pneg %p1364_p5 }
 0x4be   : > { %1672 = dma.done.wait (%p1365_p13), %s1019_s22, 128  }
 0x4bf   : > { %1674 = vsyncadd (%p1365_p13), %s1019_s22, 4294967168  ;;  %s2063_s16 = sld [smem:[#allocation23_spill]]  ;;  %s2066_s29 = smov %s1681_s30 }
 0x4c0   : > { %s2064_s6 = sld [smem:[#allocation21_spill]] }
 0x4c1   : > { %s2065_s15 = sld [smem:[#allocation24_spill]] }
 0x4c5   : > { %p32_p0 = scmp.ge.s32.totalorder %s2063_s16, 4  }
 0x4c6   : > { %s2067_s30 = smov %s2064_s6 }
 0x4c7   :  { %34 = sbr.rel (!%p32_p0) target bundleno = 16 (0x10), region = 150 }
 0x4cc   :  { %1025 = vsyncpa [#allocation3], 1 }
 0x4cd   :  { %1027 = vsyncpa [#allocation3 + $0x1], 1 }
 0x4ce   :  { %1028 = vsyncpa [#allocation6], 1 }
 0x4cf   :  { %1030 = vsyncpa [#allocation6 + $0x1], 1 }
 0x4d0   :  { %1031 = vsyncpa [#allocation9], 1 }
 0x4d1   :  { %1032 = vsyncpa [#allocation12], 1 }
 0x4d2   :  { %1033 = vsyncpa [#allocation4], 1 }
 0x4d3   :  { %1035 = vsyncpa [#allocation4 + $0x1], 1 }

</bundles_post_ra>
